<compile_context>
chip_gen: v7x
topology: tpu7x:2x2x1
jax: 0.10.0
libtpu: 0.0.40
codegen_flags: <defaults>
</compile_context>

<pallas_src>
import functools

import numpy as np
import jax
import jax.numpy as jnp
from jax import lax
from jax.experimental import pallas as pl
from jax.experimental.pallas import tpu as pltpu

# Order of the 8 gradient tensors in the min/max stats table:
#   I_low x/y, I_high x/y, gray(img) x/y, gray(label) x/y
_LGX, _LGY, _HGX, _HGY, _GIX, _GIY, _GLX, _GLY = range(8)
_N_STATS = 8
_STAT_LANES = 128  # per-block partial results are packed into one lane-dense row


# --------------------------- in-kernel helpers ---------------------------
def _grad_masks(rows, width, rows_per_image):
    """Masks that zero the wrapped column/row produced by a roll-by-one."""
    col = lax.broadcasted_iota(jnp.int32, (rows, width), 1)
    row = lax.broadcasted_iota(jnp.int32, (rows, width), 0)
    not_last_col = col != (width - 1)
    not_last_row = (row % rows_per_image) != (rows_per_image - 1)
    return not_last_col, not_last_row


def _grad_xy_abs(x, not_last_col, not_last_row):
    """|grad_x|, |grad_y| for the 2x2 'same'-padded stencils.

    grad_x[i,j] = P[i+1,j+1] - P[i+1,j],  grad_y[i,j] = P[i+1,j+1] - P[i,j+1]
    with P = x zero-padded by one row (bottom) / one column (right).
    Shifts are pltpu.roll (XLU slot) + iota masks; no scratch buffers.
    """
    rows, width = x.shape
    # roll by (size-1) == roll by -1: out[j] = in[j+1]
    xr = jnp.where(not_last_col, pltpu.roll(x, width - 1, 1), 0.0)    # P[i,  j+1]
    xd = jnp.where(not_last_row, pltpu.roll(x, rows - 1, 0), 0.0)     # P[i+1,j  ]
    xdr = jnp.where(not_last_row, pltpu.roll(xr, rows - 1, 0), 0.0)   # P[i+1,j+1]
    return jnp.abs(xdr - xd), jnp.abs(xdr - xr)


def _gray(rgb):  # rgb: (3, rows, W) -- torchvision Grayscale weights
    return 0.2989 * rgb[0] + 0.587 * rgb[1] + 0.114 * rgb[2]


def _pack_lanes(values):
    """Pack a short list of scalars into an (8, 128) row (value k at lane k)."""
    lane = lax.broadcasted_iota(jnp.int32, (8, _STAT_LANES), 1)
    packed = jnp.zeros((8, _STAT_LANES), jnp.float32)
    for k, v in enumerate(values):
        packed = jnp.where(lane == k, v, packed)
    return packed


def _safe_recip(d):
    """1/d for d >= 0.01: EUP approx reciprocal + one Newton refinement step."""
    r = pl.reciprocal(d, approx=True)
    return r * (2.0 - d * r)


# ------------------------------- pass 1 ----------------------------------
def _pass1_kernel(rlow_ref, rhigh_ref, img_ref, lab_ref, ilow_ref, ihigh_ref,
                  out_ref, *, rows_per_image):
    rows, width = ilow_ref.shape
    not_last_col, not_last_row = _grad_masks(rows, width, rows_per_image)

    i_low = ilow_ref[...]
    i_high = ihigh_ref[...]
    rlow = rlow_ref[...]
    rhigh = rhigh_ref[...]
    img = img_ref[...]
    lab = lab_ref[...]

    # Fused 3-channel L1 partial sums (means finalized in the wrapper).
    recon_low_s = jnp.sum(jnp.abs(rlow * i_low[None] - img))
    recon_high_s = jnp.sum(jnp.abs(rhigh * i_high[None] - lab))
    equal_s = jnp.sum(jnp.abs(rlow - rhigh))

    maxs = [None] * _N_STATS
    mins = [None] * _N_STATS
    sources = ((i_low, _LGX, _LGY), (i_high, _HGX, _HGY),
               (_gray(img), _GIX, _GIY), (_gray(lab), _GLX, _GLY))
    for src, kx, ky in sources:
        gx, gy = _grad_xy_abs(src, not_last_col, not_last_row)
        maxs[kx], maxs[ky] = jnp.max(gx), jnp.max(gy)
        mins[kx], mins[ky] = jnp.min(gx), jnp.min(gy)

    out_ref[0] = _pack_lanes([recon_low_s, recon_high_s, equal_s] + maxs + mins)


# ------------------------------- pass 2 ----------------------------------
def _pass2_kernel(stats_ref, ilow_ref, ihigh_ref, img_ref, lab_ref, out_ref,
                  *, rows_per_image):
    rows, width = ilow_ref.shape
    not_last_col, not_last_row = _grad_masks(rows, width, rows_per_image)

    def norm(g, k):  # grad_norm with global min (row 0) and 1/(max-min+1e-4) (row 1)
        return (g - stats_ref[0, k]) * stats_ref[1, k]

    i_low = ilow_ref[...]
    i_high = ihigh_ref[...]

    lgx_a, lgy_a = _grad_xy_abs(i_low, not_last_col, not_last_row)
    lgx, lgy = norm(lgx_a, _LGX), norm(lgy_a, _LGY)
    hgx_a, hgy_a = _grad_xy_abs(i_high, not_last_col, not_last_row)
    hgx, hgy = norm(hgx_a, _HGX), norm(hgy_a, _HGY)

    # mutual_i_loss partial sum -- consume sx / sy immediately (short live range)
    sx = lgx + hgx
    mutual_s = jnp.sum(sx * jnp.exp(-10.0 * sx))
    sy = lgy + hgy
    mutual_s = mutual_s + jnp.sum(sy * jnp.exp(-10.0 * sy))

    # mutual_i_input_loss(I_low, img)
    gix_a, giy_a = _grad_xy_abs(_gray(img_ref[...]), not_last_col, not_last_row)
    gix, giy = norm(gix_a, _GIX), norm(giy_a, _GIY)
    in_low_s = (jnp.sum(jnp.abs(lgx * _safe_recip(jnp.maximum(gix, 0.01)))) +
                jnp.sum(jnp.abs(lgy * _safe_recip(jnp.maximum(giy, 0.01)))))

    # mutual_i_input_loss(I_high, label)
    glx_a, gly_a = _grad_xy_abs(_gray(lab_ref[...]), not_last_col, not_last_row)
    glx, gly = norm(glx_a, _GLX), norm(gly_a, _GLY)
    in_high_s = (jnp.sum(jnp.abs(hgx * _safe_recip(jnp.maximum(glx, 0.01)))) +
                 jnp.sum(jnp.abs(hgy * _safe_recip(jnp.maximum(gly, 0.01)))))

    out_ref[0] = _pack_lanes([mutual_s, in_high_s, in_low_s])


# ------------------------------- wrapper ----------------------------------
def my_loss_forward(R_low, I_low, R_high, I_high, img_batch, label_batch,
                    *, images_per_block=1, vmem_limit_bytes=48 * 1024 * 1024):
    """Pallas implementation of My_loss.forward (inputs NCHW, float)."""
    R_low = jnp.asarray(R_low, jnp.float32)
    I_low = jnp.asarray(I_low, jnp.float32)
    R_high = jnp.asarray(R_high, jnp.float32)
    I_high = jnp.asarray(I_high, jnp.float32)
    img_batch = jnp.asarray(img_batch, jnp.float32)
    label_batch = jnp.asarray(label_batch, jnp.float32)

    N, C, H, W = R_low.shape
    assert C == 3
    if N % images_per_block != 0 or (images_per_block * H) % 8 != 0:
        images_per_block = N                     # fall back to one big block
    NB = N // images_per_block
    BR = images_per_block * H                    # rows per block = whole images
    NH = N * H

    def chan_major(x):   # (N, 3, H, W) -> (3, N*H, W), channel-major slabs
        return jnp.transpose(x, (1, 0, 2, 3)).reshape(3, NH, W)

    def single(x):       # (N, 1, H, W) -> (N*H, W); rows = batch*height, lanes = W
        return x.reshape(NH, W)

    rl, rh = chan_major(R_low), chan_major(R_high)
    im, lb = chan_major(img_batch), chan_major(label_batch)
    il, ih = single(I_low), single(I_high)

    spec3 = pl.BlockSpec((3, BR, W), lambda b: (0, b, 0))
    spec1 = pl.BlockSpec((BR, W), lambda b: (b, 0))
    out_spec = pl.BlockSpec((1, 8, _STAT_LANES), lambda b: (b, 0, 0))
    out_shape = jax.ShapeDtypeStruct((NB, 8, _STAT_LANES), jnp.float32)
    cparams = pltpu.CompilerParams(dimension_semantics=("parallel",),
                                   vmem_limit_bytes=vmem_limit_bytes)

    # Pass 1: L1 partial sums + per-block |gradient| min/max.
    part1 = pl.pallas_call(
        functools.partial(_pass1_kernel, rows_per_image=H),
        grid=(NB,),
        in_specs=[spec3, spec3, spec3, spec3, spec1, spec1],
        out_specs=out_spec,
        out_shape=out_shape,
        compiler_params=cparams,
    )(rl, rh, im, lb, il, ih)

    row1 = part1[:, 0, :]                               # (NB, 128)
    sums = jnp.sum(row1[:, 0:3], axis=0)                # recon_low/high, equal_R
    maxs = jnp.max(row1[:, 3:3 + _N_STATS], axis=0)
    mins = jnp.min(row1[:, 3 + _N_STATS:3 + 2 * _N_STATS], axis=0)
    stats = jnp.stack([mins, 1.0 / (maxs - mins + 1e-4)])    # (2, 8) -> SMEM

    # Pass 2: normalized gradients + mutual losses with the global stats.
    part2 = pl.pallas_call(
        functools.partial(_pass2_kernel, rows_per_image=H),
        grid=(NB,),
        in_specs=[pl.BlockSpec(memory_space=pltpu.MemorySpace.SMEM),
                  spec1, spec1, spec3, spec3],
        out_specs=out_spec,
        out_shape=out_shape,
        compiler_params=cparams,
    )(stats, il, ih, im, lb)

    row2 = part2[:, 0, :]
    n3 = jnp.float32(3 * N * H * W)
    n1 = jnp.float32(N * H * W)
    recon_low = sums[0] / n3
    recon_high = sums[1] / n3
    equal_r = sums[2] / n3
    i_mutual = jnp.sum(row2[:, 0]) / n1
    i_in_high = jnp.sum(row2[:, 1]) / n1
    i_in_low = jnp.sum(row2[:, 2]) / n1

    return (recon_high + recon_low + 0.01 * equal_r
            + 0.2 * i_mutual + 0.15 * i_in_high + 0.15 * i_in_low)


# ------------------------- pure-numpy reference -------------------------
def _ref_gradient_np(x, direction):
    n, c, h, w = x.shape
    p = np.zeros((n, c, h + 1, w + 1), dtype=x.dtype)
    p[:, :, :h, :w] = x
    if direction == "x":
        g = p[:, :, 1:, 1:] - p[:, :, 1:, :w]
    else:
        g = p[:, :, 1:, 1:] - p[:, :, :h, 1:]
    a = np.abs(g)
    return (a - a.min()) / (a.max() - a.min() + 0.0001)


def _ref_loss_np(R_low, I_low, R_high, I_high, img, lab):
    I_low3 = np.concatenate([I_low] * 3, axis=1)
    I_high3 = np.concatenate([I_high] * 3, axis=1)
    recon_low = np.mean(np.abs(R_low * I_low3 - img))
    recon_high = np.mean(np.abs(R_high * I_high3 - lab))
    equal_R = np.mean(np.abs(R_low - R_high))

    def mutual_i(il, ih):
        lgx, hgx = _ref_gradient_np(il, "x"), _ref_gradient_np(ih, "x")
        lgy, hgy = _ref_gradient_np(il, "y"), _ref_gradient_np(ih, "y")
        xl = (lgx + hgx) * np.exp(-10.0 * (lgx + hgx))
        yl = (lgy + hgy) * np.exp(-10.0 * (lgy + hgy))
        return np.mean(xl + yl)

    def mutual_i_input(I, im):
        gray = 0.2989 * im[:, 0:1] + 0.587 * im[:, 1:2] + 0.114 * im[:, 2:3]
        xl = np.abs(_ref_gradient_np(I, "x") /
                    np.maximum(_ref_gradient_np(gray, "x"), 0.01))
        yl = np.abs(_ref_gradient_np(I, "y") /
                    np.maximum(_ref_gradient_np(gray, "y"), 0.01))
        return np.mean(xl + yl)

    return (recon_high + recon_low + 0.01 * equal_R
            + 0.2 * mutual_i(I_low, I_high)
            + 0.15 * mutual_i_input(I_high, lab)
            + 0.15 * mutual_i_input(I_low, img))


if __name__ == "__main__":
    key = jax.random.PRNGKey(0)
    ks = jax.random.split(key, 6)
    N, H, W = 2, 16, 16
    R_low = jax.random.uniform(ks[0], (N, 3, H, W), jnp.float32)
    I_low = jax.random.uniform(ks[1], (N, 1, H, W), jnp.float32)
    R_high = jax.random.uniform(ks[2], (N, 3, H, W), jnp.float32)
    I_high = jax.random.uniform(ks[3], (N, 1, H, W), jnp.float32)
    img_batch = jax.random.uniform(ks[4], (N, 3, H, W), jnp.float32)
    label_batch = jax.random.uniform(ks[5], (N, 3, H, W), jnp.float32)

    loss = my_loss_forward(R_low, I_low, R_high, I_high, img_batch, label_batch)
    loss = jax.block_until_ready(loss)

    ref = _ref_loss_np(np.asarray(R_low, np.float64), np.asarray(I_low, np.float64),
                       np.asarray(R_high, np.float64), np.asarray(I_high, np.float64),
                       np.asarray(img_batch, np.float64),
                       np.asarray(label_batch, np.float64))
    np.testing.assert_allclose(float(loss), float(ref), rtol=1e-3, atol=1e-4)
    print("KERNEL_OK")
</pallas_src>

<mosaic_0001>
module attributes {stable_mosaic.version = 11 : i64} {
  func.func @_pass1_kernel(%arg0: i32, %arg1: memref<3x16x16xf32, #tpu.memory_space<vmem>>, %arg2: memref<3x16x16xf32, #tpu.memory_space<vmem>>, %arg3: memref<3x16x16xf32, #tpu.memory_space<vmem>>, %arg4: memref<3x16x16xf32, #tpu.memory_space<vmem>>, %arg5: memref<16x16xf32, #tpu.memory_space<vmem>>, %arg6: memref<16x16xf32, #tpu.memory_space<vmem>>, %arg7: memref<1x8x128xf32, #tpu.memory_space<vmem>>) attributes {dimension_semantics = [#tpu.dimension_semantics<parallel>], iteration_bounds = array<i64: 2>, scalar_prefetch = 0 : i64, scratch_operands = 0 : i64, tpu.core_type = #tpu.core_type<tc>, window_params = [{transform_indices = @transform_0, window_bounds = array<i64: 3, 16, 16>}, {transform_indices = @transform_1, window_bounds = array<i64: 3, 16, 16>}, {transform_indices = @transform_2, window_bounds = array<i64: 3, 16, 16>}, {transform_indices = @transform_3, window_bounds = array<i64: 3, 16, 16>}, {transform_indices = @transform_4, window_bounds = array<i64: 16, 16>}, {transform_indices = @transform_5, window_bounds = array<i64: 16, 16>}, {transform_indices = @transform_6, window_bounds = array<i64: 1, 8, 128>}]} {
    %0 = tpu.iota {dimensions = array<i32: 1>} : vector<16x16xi32>
    %1 = tpu.iota {dimensions = array<i32: 0>} : vector<16x16xi32>
    %c15_i32 = arith.constant 15 : i32
    %2 = vector.broadcast %c15_i32 : i32 to vector<16x16xi32>
    %3 = arith.cmpi ne, %0, %2 : vector<16x16xi32>
    %c16_i32 = arith.constant 16 : i32
    %c0_i32 = arith.constant 0 : i32
    %4 = arith.cmpi eq, %c16_i32, %c0_i32 : i32
    %c1_i32 = arith.constant 1 : i32
    %5 = arith.select %4, %c1_i32, %c16_i32 : i32
    %6 = vector.broadcast %5 : i32 to vector<16x16xi32>
    %7 = arith.remsi %1, %6 : vector<16x16xi32>
    %c0_i32_0 = arith.constant 0 : i32
    %8 = vector.broadcast %c0_i32_0 : i32 to vector<16x16xi32>
    %9 = arith.cmpi ne, %7, %8 : vector<16x16xi32>
    %c0_i32_1 = arith.constant 0 : i32
    %10 = vector.broadcast %c0_i32_1 : i32 to vector<16x16xi32>
    %11 = arith.cmpi slt, %7, %10 : vector<16x16xi32>
    %c0_i32_2 = arith.constant 0 : i32
    %12 = arith.cmpi slt, %5, %c0_i32_2 : i32
    %13 = vector.broadcast %12 : i1 to vector<16x16xi1>
    %14 = vector.broadcast %13 : vector<16x16xi1> to vector<16x16xi1>
    %15 = arith.xori %11, %14 : vector<16x16xi1>
    %16 = arith.andi %15, %9 : vector<16x16xi1>
    %17 = vector.broadcast %5 : i32 to vector<16x16xi32>
    %18 = arith.addi %7, %17 : vector<16x16xi32>
    %19 = arith.select %16, %18, %7 : vector<16x16xi1>, vector<16x16xi32>
    %c15_i32_3 = arith.constant 15 : i32
    %20 = vector.broadcast %c15_i32_3 : i32 to vector<16x16xi32>
    %21 = arith.cmpi ne, %19, %20 : vector<16x16xi32>
    %c0 = arith.constant 0 : index
    %c0_4 = arith.constant 0 : index
    %22 = vector.load %arg5[%c0, %c0_4] : memref<16x16xf32, #tpu.memory_space<vmem>>, vector<16x16xf32>
    %c0_5 = arith.constant 0 : index
    %c0_6 = arith.constant 0 : index
    %23 = vector.load %arg6[%c0_5, %c0_6] : memref<16x16xf32, #tpu.memory_space<vmem>>, vector<16x16xf32>
    %c0_7 = arith.constant 0 : index
    %c0_8 = arith.constant 0 : index
    %c0_9 = arith.constant 0 : index
    %24 = vector.load %arg1[%c0_7, %c0_8, %c0_9] : memref<3x16x16xf32, #tpu.memory_space<vmem>>, vector<3x16x16xf32>
    %c0_10 = arith.constant 0 : index
    %c0_11 = arith.constant 0 : index
    %c0_12 = arith.constant 0 : index
    %25 = vector.load %arg2[%c0_10, %c0_11, %c0_12] : memref<3x16x16xf32, #tpu.memory_space<vmem>>, vector<3x16x16xf32>
    %c0_13 = arith.constant 0 : index
    %c0_14 = arith.constant 0 : index
    %c0_15 = arith.constant 0 : index
    %26 = vector.load %arg3[%c0_13, %c0_14, %c0_15] : memref<3x16x16xf32, #tpu.memory_space<vmem>>, vector<3x16x16xf32>
    %c0_16 = arith.constant 0 : index
    %c0_17 = arith.constant 0 : index
    %c0_18 = arith.constant 0 : index
    %27 = vector.load %arg4[%c0_16, %c0_17, %c0_18] : memref<3x16x16xf32, #tpu.memory_space<vmem>>, vector<3x16x16xf32>
    %28 = vector.shape_cast %22 : vector<16x16xf32> to vector<1x16x16xf32>
    %29 = vector.broadcast %28 : vector<1x16x16xf32> to vector<3x16x16xf32>
    %30 = arith.mulf %24, %29 : vector<3x16x16xf32>
    %31 = arith.subf %30, %26 : vector<3x16x16xf32>
    %32 = math.absf %31 : vector<3x16x16xf32>
    %33 = vector.shape_cast %32 : vector<3x16x16xf32> to vector<1x3x16x16xf32>
    %cst = arith.constant dense<0.000000e+00> : vector<1xf32>
    %34 = vector.multi_reduction <add>, %33, %cst [1, 2, 3] : vector<1x3x16x16xf32> to vector<1xf32>
    %35 = vector.shape_cast %34 : vector<1xf32> to vector<1x1x1x1xf32>
    %36 = vector.extract %35[0, 0, 0, 0] : f32 from vector<1x1x1x1xf32>
    %37 = vector.shape_cast %23 : vector<16x16xf32> to vector<1x16x16xf32>
    %38 = vector.broadcast %37 : vector<1x16x16xf32> to vector<3x16x16xf32>
    %39 = arith.mulf %25, %38 : vector<3x16x16xf32>
    %40 = arith.subf %39, %27 : vector<3x16x16xf32>
    %41 = math.absf %40 : vector<3x16x16xf32>
    %42 = vector.shape_cast %41 : vector<3x16x16xf32> to vector<1x3x16x16xf32>
    %cst_19 = arith.constant dense<0.000000e+00> : vector<1xf32>
    %43 = vector.multi_reduction <add>, %42, %cst_19 [1, 2, 3] : vector<1x3x16x16xf32> to vector<1xf32>
    %44 = vector.shape_cast %43 : vector<1xf32> to vector<1x1x1x1xf32>
    %45 = vector.extract %44[0, 0, 0, 0] : f32 from vector<1x1x1x1xf32>
    %46 = arith.subf %24, %25 : vector<3x16x16xf32>
    %47 = math.absf %46 : vector<3x16x16xf32>
    %48 = vector.shape_cast %47 : vector<3x16x16xf32> to vector<1x3x16x16xf32>
    %cst_20 = arith.constant dense<0.000000e+00> : vector<1xf32>
    %49 = vector.multi_reduction <add>, %48, %cst_20 [1, 2, 3] : vector<1x3x16x16xf32> to vector<1xf32>
    %50 = vector.shape_cast %49 : vector<1xf32> to vector<1x1x1x1xf32>
    %51 = vector.extract %50[0, 0, 0, 0] : f32 from vector<1x1x1x1xf32>
    %52 = vector.extract_strided_slice %26 {offsets = [0, 0, 0], sizes = [1, 16, 16], strides = [1, 1, 1]} : vector<3x16x16xf32> to vector<1x16x16xf32>
    %53 = vector.shape_cast %52 : vector<1x16x16xf32> to vector<16x16xf32>
    %cst_21 = arith.constant 2.989000e-01 : f32
    %54 = vector.broadcast %cst_21 : f32 to vector<16x16xf32>
    %55 = arith.mulf %54, %53 : vector<16x16xf32>
    %56 = vector.extract_strided_slice %26 {offsets = [1, 0, 0], sizes = [1, 16, 16], strides = [1, 1, 1]} : vector<3x16x16xf32> to vector<1x16x16xf32>
    %57 = vector.shape_cast %56 : vector<1x16x16xf32> to vector<16x16xf32>
    %cst_22 = arith.constant 5.870000e-01 : f32
    %58 = vector.broadcast %cst_22 : f32 to vector<16x16xf32>
    %59 = arith.mulf %58, %57 : vector<16x16xf32>
    %60 = arith.addf %55, %59 : vector<16x16xf32>
    %61 = vector.extract_strided_slice %26 {offsets = [2, 0, 0], sizes = [1, 16, 16], strides = [1, 1, 1]} : vector<3x16x16xf32> to vector<1x16x16xf32>
    %62 = vector.shape_cast %61 : vector<1x16x16xf32> to vector<16x16xf32>
    %cst_23 = arith.constant 1.140000e-01 : f32
    %63 = vector.broadcast %cst_23 : f32 to vector<16x16xf32>
    %64 = arith.mulf %63, %62 : vector<16x16xf32>
    %65 = arith.addf %60, %64 : vector<16x16xf32>
    %66 = vector.extract_strided_slice %27 {offsets = [0, 0, 0], sizes = [1, 16, 16], strides = [1, 1, 1]} : vector<3x16x16xf32> to vector<1x16x16xf32>
    %67 = vector.shape_cast %66 : vector<1x16x16xf32> to vector<16x16xf32>
    %cst_24 = arith.constant 2.989000e-01 : f32
    %68 = vector.broadcast %cst_24 : f32 to vector<16x16xf32>
    %69 = arith.mulf %68, %67 : vector<16x16xf32>
    %70 = vector.extract_strided_slice %27 {offsets = [1, 0, 0], sizes = [1, 16, 16], strides = [1, 1, 1]} : vector<3x16x16xf32> to vector<1x16x16xf32>
    %71 = vector.shape_cast %70 : vector<1x16x16xf32> to vector<16x16xf32>
    %cst_25 = arith.constant 5.870000e-01 : f32
    %72 = vector.broadcast %cst_25 : f32 to vector<16x16xf32>
    %73 = arith.mulf %72, %71 : vector<16x16xf32>
    %74 = arith.addf %69, %73 : vector<16x16xf32>
    %75 = vector.extract_strided_slice %27 {offsets = [2, 0, 0], sizes = [1, 16, 16], strides = [1, 1, 1]} : vector<3x16x16xf32> to vector<1x16x16xf32>
    %76 = vector.shape_cast %75 : vector<1x16x16xf32> to vector<16x16xf32>
    %cst_26 = arith.constant 1.140000e-01 : f32
    %77 = vector.broadcast %cst_26 : f32 to vector<16x16xf32>
    %78 = arith.mulf %77, %76 : vector<16x16xf32>
    %79 = arith.addf %74, %78 : vector<16x16xf32>
    %c15_i32_27 = arith.constant 15 : i32
    %80 = tpu.dynamic_rotate %22 by %c15_i32_27 dim 1 : vector<16x16xf32>, i32 -> vector<16x16xf32>
    %cst_28 = arith.constant 0.000000e+00 : f32
    %81 = vector.broadcast %cst_28 : f32 to vector<16x16xf32>
    %82 = arith.select %3, %80, %81 : vector<16x16xi1>, vector<16x16xf32>
    %c15_i32_29 = arith.constant 15 : i32
    %83 = tpu.dynamic_rotate %22 by %c15_i32_29 dim 0 : vector<16x16xf32>, i32 -> vector<16x16xf32>
    %cst_30 = arith.constant 0.000000e+00 : f32
    %84 = vector.broadcast %cst_30 : f32 to vector<16x16xf32>
    %85 = arith.select %21, %83, %84 : vector<16x16xi1>, vector<16x16xf32>
    %c15_i32_31 = arith.constant 15 : i32
    %86 = tpu.dynamic_rotate %82 by %c15_i32_31 dim 0 : vector<16x16xf32>, i32 -> vector<16x16xf32>
    %cst_32 = arith.constant 0.000000e+00 : f32
    %87 = vector.broadcast %cst_32 : f32 to vector<16x16xf32>
    %88 = arith.select %21, %86, %87 : vector<16x16xi1>, vector<16x16xf32>
    %89 = arith.subf %88, %85 : vector<16x16xf32>
    %90 = math.absf %89 : vector<16x16xf32>
    %91 = arith.subf %88, %82 : vector<16x16xf32>
    %92 = math.absf %91 : vector<16x16xf32>
    %93 = vector.shape_cast %90 : vector<16x16xf32> to vector<1x16x16xf32>
    %cst_33 = arith.constant dense<0xFF800000> : vector<1xf32>
    %94 = vector.multi_reduction <maximumf>, %93, %cst_33 [1, 2] : vector<1x16x16xf32> to vector<1xf32>
    %95 = vector.shape_cast %94 : vector<1xf32> to vector<1x1x1xf32>
    %96 = vector.extract %95[0, 0, 0] : f32 from vector<1x1x1xf32>
    %97 = vector.shape_cast %92 : vector<16x16xf32> to vector<1x16x16xf32>
    %cst_34 = arith.constant dense<0xFF800000> : vector<1xf32>
    %98 = vector.multi_reduction <maximumf>, %97, %cst_34 [1, 2] : vector<1x16x16xf32> to vector<1xf32>
    %99 = vector.shape_cast %98 : vector<1xf32> to vector<1x1x1xf32>
    %100 = vector.extract %99[0, 0, 0] : f32 from vector<1x1x1xf32>
    %101 = vector.shape_cast %90 : vector<16x16xf32> to vector<1x16x16xf32>
    %cst_35 = arith.constant dense<0x7F800000> : vector<1xf32>
    %102 = vector.multi_reduction <minimumf>, %101, %cst_35 [1, 2] : vector<1x16x16xf32> to vector<1xf32>
    %103 = vector.shape_cast %102 : vector<1xf32> to vector<1x1x1xf32>
    %104 = vector.extract %103[0, 0, 0] : f32 from vector<1x1x1xf32>
    %105 = vector.shape_cast %92 : vector<16x16xf32> to vector<1x16x16xf32>
    %cst_36 = arith.constant dense<0x7F800000> : vector<1xf32>
    %106 = vector.multi_reduction <minimumf>, %105, %cst_36 [1, 2] : vector<1x16x16xf32> to vector<1xf32>
    %107 = vector.shape_cast %106 : vector<1xf32> to vector<1x1x1xf32>
    %108 = vector.extract %107[0, 0, 0] : f32 from vector<1x1x1xf32>
    %c15_i32_37 = arith.constant 15 : i32
    %109 = tpu.dynamic_rotate %23 by %c15_i32_37 dim 1 : vector<16x16xf32>, i32 -> vector<16x16xf32>
    %cst_38 = arith.constant 0.000000e+00 : f32
    %110 = vector.broadcast %cst_38 : f32 to vector<16x16xf32>
    %111 = arith.select %3, %109, %110 : vector<16x16xi1>, vector<16x16xf32>
    %c15_i32_39 = arith.constant 15 : i32
    %112 = tpu.dynamic_rotate %23 by %c15_i32_39 dim 0 : vector<16x16xf32>, i32 -> vector<16x16xf32>
    %cst_40 = arith.constant 0.000000e+00 : f32
    %113 = vector.broadcast %cst_40 : f32 to vector<16x16xf32>
    %114 = arith.select %21, %112, %113 : vector<16x16xi1>, vector<16x16xf32>
    %c15_i32_41 = arith.constant 15 : i32
    %115 = tpu.dynamic_rotate %111 by %c15_i32_41 dim 0 : vector<16x16xf32>, i32 -> vector<16x16xf32>
    %cst_42 = arith.constant 0.000000e+00 : f32
    %116 = vector.broadcast %cst_42 : f32 to vector<16x16xf32>
    %117 = arith.select %21, %115, %116 : vector<16x16xi1>, vector<16x16xf32>
    %118 = arith.subf %117, %114 : vector<16x16xf32>
    %119 = math.absf %118 : vector<16x16xf32>
    %120 = arith.subf %117, %111 : vector<16x16xf32>
    %121 = math.absf %120 : vector<16x16xf32>
    %122 = vector.shape_cast %119 : vector<16x16xf32> to vector<1x16x16xf32>
    %cst_43 = arith.constant dense<0xFF800000> : vector<1xf32>
    %123 = vector.multi_reduction <maximumf>, %122, %cst_43 [1, 2] : vector<1x16x16xf32> to vector<1xf32>
    %124 = vector.shape_cast %123 : vector<1xf32> to vector<1x1x1xf32>
    %125 = vector.extract %124[0, 0, 0] : f32 from vector<1x1x1xf32>
    %126 = vector.shape_cast %121 : vector<16x16xf32> to vector<1x16x16xf32>
    %cst_44 = arith.constant dense<0xFF800000> : vector<1xf32>
    %127 = vector.multi_reduction <maximumf>, %126, %cst_44 [1, 2] : vector<1x16x16xf32> to vector<1xf32>
    %128 = vector.shape_cast %127 : vector<1xf32> to vector<1x1x1xf32>
    %129 = vector.extract %128[0, 0, 0] : f32 from vector<1x1x1xf32>
    %130 = vector.shape_cast %119 : vector<16x16xf32> to vector<1x16x16xf32>
    %cst_45 = arith.constant dense<0x7F800000> : vector<1xf32>
    %131 = vector.multi_reduction <minimumf>, %130, %cst_45 [1, 2] : vector<1x16x16xf32> to vector<1xf32>
    %132 = vector.shape_cast %131 : vector<1xf32> to vector<1x1x1xf32>
    %133 = vector.extract %132[0, 0, 0] : f32 from vector<1x1x1xf32>
    %134 = vector.shape_cast %121 : vector<16x16xf32> to vector<1x16x16xf32>
    %cst_46 = arith.constant dense<0x7F800000> : vector<1xf32>
    %135 = vector.multi_reduction <minimumf>, %134, %cst_46 [1, 2] : vector<1x16x16xf32> to vector<1xf32>
    %136 = vector.shape_cast %135 : vector<1xf32> to vector<1x1x1xf32>
    %137 = vector.extract %136[0, 0, 0] : f32 from vector<1x1x1xf32>
    %c15_i32_47 = arith.constant 15 : i32
    %138 = tpu.dynamic_rotate %65 by %c15_i32_47 dim 1 : vector<16x16xf32>, i32 -> vector<16x16xf32>
    %cst_48 = arith.constant 0.000000e+00 : f32
    %139 = vector.broadcast %cst_48 : f32 to vector<16x16xf32>
    %140 = arith.select %3, %138, %139 : vector<16x16xi1>, vector<16x16xf32>
    %c15_i32_49 = arith.constant 15 : i32
    %141 = tpu.dynamic_rotate %65 by %c15_i32_49 dim 0 : vector<16x16xf32>, i32 -> vector<16x16xf32>
    %cst_50 = arith.constant 0.000000e+00 : f32
    %142 = vector.broadcast %cst_50 : f32 to vector<16x16xf32>
    %143 = arith.select %21, %141, %142 : vector<16x16xi1>, vector<16x16xf32>
    %c15_i32_51 = arith.constant 15 : i32
    %144 = tpu.dynamic_rotate %140 by %c15_i32_51 dim 0 : vector<16x16xf32>, i32 -> vector<16x16xf32>
    %cst_52 = arith.constant 0.000000e+00 : f32
    %145 = vector.broadcast %cst_52 : f32 to vector<16x16xf32>
    %146 = arith.select %21, %144, %145 : vector<16x16xi1>, vector<16x16xf32>
    %147 = arith.subf %146, %143 : vector<16x16xf32>
    %148 = math.absf %147 : vector<16x16xf32>
    %149 = arith.subf %146, %140 : vector<16x16xf32>
    %150 = math.absf %149 : vector<16x16xf32>
    %151 = vector.shape_cast %148 : vector<16x16xf32> to vector<1x16x16xf32>
    %cst_53 = arith.constant dense<0xFF800000> : vector<1xf32>
    %152 = vector.multi_reduction <maximumf>, %151, %cst_53 [1, 2] : vector<1x16x16xf32> to vector<1xf32>
    %153 = vector.shape_cast %152 : vector<1xf32> to vector<1x1x1xf32>
    %154 = vector.extract %153[0, 0, 0] : f32 from vector<1x1x1xf32>
    %155 = vector.shape_cast %150 : vector<16x16xf32> to vector<1x16x16xf32>
    %cst_54 = arith.constant dense<0xFF800000> : vector<1xf32>
    %156 = vector.multi_reduction <maximumf>, %155, %cst_54 [1, 2] : vector<1x16x16xf32> to vector<1xf32>
    %157 = vector.shape_cast %156 : vector<1xf32> to vector<1x1x1xf32>
    %158 = vector.extract %157[0, 0, 0] : f32 from vector<1x1x1xf32>
    %159 = vector.shape_cast %148 : vector<16x16xf32> to vector<1x16x16xf32>
    %cst_55 = arith.constant dense<0x7F800000> : vector<1xf32>
    %160 = vector.multi_reduction <minimumf>, %159, %cst_55 [1, 2] : vector<1x16x16xf32> to vector<1xf32>
    %161 = vector.shape_cast %160 : vector<1xf32> to vector<1x1x1xf32>
    %162 = vector.extract %161[0, 0, 0] : f32 from vector<1x1x1xf32>
    %163 = vector.shape_cast %150 : vector<16x16xf32> to vector<1x16x16xf32>
    %cst_56 = arith.constant dense<0x7F800000> : vector<1xf32>
    %164 = vector.multi_reduction <minimumf>, %163, %cst_56 [1, 2] : vector<1x16x16xf32> to vector<1xf32>
    %165 = vector.shape_cast %164 : vector<1xf32> to vector<1x1x1xf32>
    %166 = vector.extract %165[0, 0, 0] : f32 from vector<1x1x1xf32>
    %c15_i32_57 = arith.constant 15 : i32
    %167 = tpu.dynamic_rotate %79 by %c15_i32_57 dim 1 : vector<16x16xf32>, i32 -> vector<16x16xf32>
    %cst_58 = arith.constant 0.000000e+00 : f32
    %168 = vector.broadcast %cst_58 : f32 to vector<16x16xf32>
    %169 = arith.select %3, %167, %168 : vector<16x16xi1>, vector<16x16xf32>
    %c15_i32_59 = arith.constant 15 : i32
    %170 = tpu.dynamic_rotate %79 by %c15_i32_59 dim 0 : vector<16x16xf32>, i32 -> vector<16x16xf32>
    %cst_60 = arith.constant 0.000000e+00 : f32
    %171 = vector.broadcast %cst_60 : f32 to vector<16x16xf32>
    %172 = arith.select %21, %170, %171 : vector<16x16xi1>, vector<16x16xf32>
    %c15_i32_61 = arith.constant 15 : i32
    %173 = tpu.dynamic_rotate %169 by %c15_i32_61 dim 0 : vector<16x16xf32>, i32 -> vector<16x16xf32>
    %cst_62 = arith.constant 0.000000e+00 : f32
    %174 = vector.broadcast %cst_62 : f32 to vector<16x16xf32>
    %175 = arith.select %21, %173, %174 : vector<16x16xi1>, vector<16x16xf32>
    %176 = arith.subf %175, %172 : vector<16x16xf32>
    %177 = math.absf %176 : vector<16x16xf32>
    %178 = arith.subf %175, %169 : vector<16x16xf32>
    %179 = math.absf %178 : vector<16x16xf32>
    %180 = vector.shape_cast %177 : vector<16x16xf32> to vector<1x16x16xf32>
    %cst_63 = arith.constant dense<0xFF800000> : vector<1xf32>
    %181 = vector.multi_reduction <maximumf>, %180, %cst_63 [1, 2] : vector<1x16x16xf32> to vector<1xf32>
    %182 = vector.shape_cast %181 : vector<1xf32> to vector<1x1x1xf32>
    %183 = vector.extract %182[0, 0, 0] : f32 from vector<1x1x1xf32>
    %184 = vector.shape_cast %179 : vector<16x16xf32> to vector<1x16x16xf32>
    %cst_64 = arith.constant dense<0xFF800000> : vector<1xf32>
    %185 = vector.multi_reduction <maximumf>, %184, %cst_64 [1, 2] : vector<1x16x16xf32> to vector<1xf32>
    %186 = vector.shape_cast %185 : vector<1xf32> to vector<1x1x1xf32>
    %187 = vector.extract %186[0, 0, 0] : f32 from vector<1x1x1xf32>
    %188 = vector.shape_cast %177 : vector<16x16xf32> to vector<1x16x16xf32>
    %cst_65 = arith.constant dense<0x7F800000> : vector<1xf32>
    %189 = vector.multi_reduction <minimumf>, %188, %cst_65 [1, 2] : vector<1x16x16xf32> to vector<1xf32>
    %190 = vector.shape_cast %189 : vector<1xf32> to vector<1x1x1xf32>
    %191 = vector.extract %190[0, 0, 0] : f32 from vector<1x1x1xf32>
    %192 = vector.shape_cast %179 : vector<16x16xf32> to vector<1x16x16xf32>
    %cst_66 = arith.constant dense<0x7F800000> : vector<1xf32>
    %193 = vector.multi_reduction <minimumf>, %192, %cst_66 [1, 2] : vector<1x16x16xf32> to vector<1xf32>
    %194 = vector.shape_cast %193 : vector<1xf32> to vector<1x1x1xf32>
    %195 = vector.extract %194[0, 0, 0] : f32 from vector<1x1x1xf32>
    %196 = tpu.iota {dimensions = array<i32: 1>} : vector<8x128xi32>
    %cst_67 = arith.constant 0.000000e+00 : f32
    %197 = vector.broadcast %cst_67 : f32 to vector<8x128xf32>
    %c0_i32_68 = arith.constant 0 : i32
    %198 = vector.broadcast %c0_i32_68 : i32 to vector<8x128xi32>
    %199 = arith.cmpi eq, %196, %198 : vector<8x128xi32>
    %200 = vector.broadcast %36 : f32 to vector<8x128xf32>
    %201 = arith.select %199, %200, %197 : vector<8x128xi1>, vector<8x128xf32>
    %c1_i32_69 = arith.constant 1 : i32
    %202 = vector.broadcast %c1_i32_69 : i32 to vector<8x128xi32>
    %203 = arith.cmpi eq, %196, %202 : vector<8x128xi32>
    %204 = vector.broadcast %45 : f32 to vector<8x128xf32>
    %205 = arith.select %203, %204, %201 : vector<8x128xi1>, vector<8x128xf32>
    %c2_i32 = arith.constant 2 : i32
    %206 = vector.broadcast %c2_i32 : i32 to vector<8x128xi32>
    %207 = arith.cmpi eq, %196, %206 : vector<8x128xi32>
    %208 = vector.broadcast %51 : f32 to vector<8x128xf32>
    %209 = arith.select %207, %208, %205 : vector<8x128xi1>, vector<8x128xf32>
    %c3_i32 = arith.constant 3 : i32
    %210 = vector.broadcast %c3_i32 : i32 to vector<8x128xi32>
    %211 = arith.cmpi eq, %196, %210 : vector<8x128xi32>
    %212 = vector.broadcast %96 : f32 to vector<8x128xf32>
    %213 = arith.select %211, %212, %209 : vector<8x128xi1>, vector<8x128xf32>
    %c4_i32 = arith.constant 4 : i32
    %214 = vector.broadcast %c4_i32 : i32 to vector<8x128xi32>
    %215 = arith.cmpi eq, %196, %214 : vector<8x128xi32>
    %216 = vector.broadcast %100 : f32 to vector<8x128xf32>
    %217 = arith.select %215, %216, %213 : vector<8x128xi1>, vector<8x128xf32>
    %c5_i32 = arith.constant 5 : i32
    %218 = vector.broadcast %c5_i32 : i32 to vector<8x128xi32>
    %219 = arith.cmpi eq, %196, %218 : vector<8x128xi32>
    %220 = vector.broadcast %125 : f32 to vector<8x128xf32>
    %221 = arith.select %219, %220, %217 : vector<8x128xi1>, vector<8x128xf32>
    %c6_i32 = arith.constant 6 : i32
    %222 = vector.broadcast %c6_i32 : i32 to vector<8x128xi32>
    %223 = arith.cmpi eq, %196, %222 : vector<8x128xi32>
    %224 = vector.broadcast %129 : f32 to vector<8x128xf32>
    %225 = arith.select %223, %224, %221 : vector<8x128xi1>, vector<8x128xf32>
    %c7_i32 = arith.constant 7 : i32
    %226 = vector.broadcast %c7_i32 : i32 to vector<8x128xi32>
    %227 = arith.cmpi eq, %196, %226 : vector<8x128xi32>
    %228 = vector.broadcast %154 : f32 to vector<8x128xf32>
    %229 = arith.select %227, %228, %225 : vector<8x128xi1>, vector<8x128xf32>
    %c8_i32 = arith.constant 8 : i32
    %230 = vector.broadcast %c8_i32 : i32 to vector<8x128xi32>
    %231 = arith.cmpi eq, %196, %230 : vector<8x128xi32>
    %232 = vector.broadcast %158 : f32 to vector<8x128xf32>
    %233 = arith.select %231, %232, %229 : vector<8x128xi1>, vector<8x128xf32>
    %c9_i32 = arith.constant 9 : i32
    %234 = vector.broadcast %c9_i32 : i32 to vector<8x128xi32>
    %235 = arith.cmpi eq, %196, %234 : vector<8x128xi32>
    %236 = vector.broadcast %183 : f32 to vector<8x128xf32>
    %237 = arith.select %235, %236, %233 : vector<8x128xi1>, vector<8x128xf32>
    %c10_i32 = arith.constant 10 : i32
    %238 = vector.broadcast %c10_i32 : i32 to vector<8x128xi32>
    %239 = arith.cmpi eq, %196, %238 : vector<8x128xi32>
    %240 = vector.broadcast %187 : f32 to vector<8x128xf32>
    %241 = arith.select %239, %240, %237 : vector<8x128xi1>, vector<8x128xf32>
    %c11_i32 = arith.constant 11 : i32
    %242 = vector.broadcast %c11_i32 : i32 to vector<8x128xi32>
    %243 = arith.cmpi eq, %196, %242 : vector<8x128xi32>
    %244 = vector.broadcast %104 : f32 to vector<8x128xf32>
    %245 = arith.select %243, %244, %241 : vector<8x128xi1>, vector<8x128xf32>
    %c12_i32 = arith.constant 12 : i32
    %246 = vector.broadcast %c12_i32 : i32 to vector<8x128xi32>
    %247 = arith.cmpi eq, %196, %246 : vector<8x128xi32>
    %248 = vector.broadcast %108 : f32 to vector<8x128xf32>
    %249 = arith.select %247, %248, %245 : vector<8x128xi1>, vector<8x128xf32>
    %c13_i32 = arith.constant 13 : i32
    %250 = vector.broadcast %c13_i32 : i32 to vector<8x128xi32>
    %251 = arith.cmpi eq, %196, %250 : vector<8x128xi32>
    %252 = vector.broadcast %133 : f32 to vector<8x128xf32>
    %253 = arith.select %251, %252, %249 : vector<8x128xi1>, vector<8x128xf32>
    %c14_i32 = arith.constant 14 : i32
    %254 = vector.broadcast %c14_i32 : i32 to vector<8x128xi32>
    %255 = arith.cmpi eq, %196, %254 : vector<8x128xi32>
    %256 = vector.broadcast %137 : f32 to vector<8x128xf32>
    %257 = arith.select %255, %256, %253 : vector<8x128xi1>, vector<8x128xf32>
    %c15_i32_70 = arith.constant 15 : i32
    %258 = vector.broadcast %c15_i32_70 : i32 to vector<8x128xi32>
    %259 = arith.cmpi eq, %196, %258 : vector<8x128xi32>
    %260 = vector.broadcast %162 : f32 to vector<8x128xf32>
    %261 = arith.select %259, %260, %257 : vector<8x128xi1>, vector<8x128xf32>
    %c16_i32_71 = arith.constant 16 : i32
    %262 = vector.broadcast %c16_i32_71 : i32 to vector<8x128xi32>
    %263 = arith.cmpi eq, %196, %262 : vector<8x128xi32>
    %264 = vector.broadcast %166 : f32 to vector<8x128xf32>
    %265 = arith.select %263, %264, %261 : vector<8x128xi1>, vector<8x128xf32>
    %c17_i32 = arith.constant 17 : i32
    %266 = vector.broadcast %c17_i32 : i32 to vector<8x128xi32>
    %267 = arith.cmpi eq, %196, %266 : vector<8x128xi32>
    %268 = vector.broadcast %191 : f32 to vector<8x128xf32>
    %269 = arith.select %267, %268, %265 : vector<8x128xi1>, vector<8x128xf32>
    %c18_i32 = arith.constant 18 : i32
    %270 = vector.broadcast %c18_i32 : i32 to vector<8x128xi32>
    %271 = arith.cmpi eq, %196, %270 : vector<8x128xi32>
    %272 = vector.broadcast %195 : f32 to vector<8x128xf32>
    %273 = arith.select %271, %272, %269 : vector<8x128xi1>, vector<8x128xf32>
    %c0_72 = arith.constant 0 : index
    %c0_73 = arith.constant 0 : index
    %c0_74 = arith.constant 0 : index
    %274 = vector.load %arg7[%c0_72, %c0_73, %c0_74] : memref<1x8x128xf32, #tpu.memory_space<vmem>>, vector<1x8x128xf32>
    %275 = vector.shape_cast %274 : vector<1x8x128xf32> to vector<8x128xf32>
    %276 = vector.shape_cast %273 : vector<8x128xf32> to vector<1x8x128xf32>
    tpu.vector_store %arg7[%c0_72, %c0_73, %c0_74], %276 {strides = array<i32>} : memref<1x8x128xf32, #tpu.memory_space<vmem>>, vector<1x8x128xf32>,
    return
  }
  func.func @transform_0(%arg0: i32) -> (i32, i32, i32) {
    %c0_i32 = arith.constant 0 : i32
    %c0_i32_0 = arith.constant 0 : i32
    %c0_i32_1 = arith.constant 0 : i32
    return %c0_i32, %arg0, %c0_i32_0 : i32, i32, i32
  }
  func.func @transform_1(%arg0: i32) -> (i32, i32, i32) {
    %c0_i32 = arith.constant 0 : i32
    %c0_i32_0 = arith.constant 0 : i32
    %c0_i32_1 = arith.constant 0 : i32
    return %c0_i32, %arg0, %c0_i32_0 : i32, i32, i32
  }
  func.func @transform_2(%arg0: i32) -> (i32, i32, i32) {
    %c0_i32 = arith.constant 0 : i32
    %c0_i32_0 = arith.constant 0 : i32
    %c0_i32_1 = arith.constant 0 : i32
    return %c0_i32, %arg0, %c0_i32_0 : i32, i32, i32
  }
  func.func @transform_3(%arg0: i32) -> (i32, i32, i32) {
    %c0_i32 = arith.constant 0 : i32
    %c0_i32_0 = arith.constant 0 : i32
    %c0_i32_1 = arith.constant 0 : i32
    return %c0_i32, %arg0, %c0_i32_0 : i32, i32, i32
  }
  func.func @transform_4(%arg0: i32) -> (i32, i32) {
    %c0_i32 = arith.constant 0 : i32
    %c0_i32_0 = arith.constant 0 : i32
    return %arg0, %c0_i32 : i32, i32
  }
  func.func @transform_5(%arg0: i32) -> (i32, i32) {
    %c0_i32 = arith.constant 0 : i32
    %c0_i32_0 = arith.constant 0 : i32
    return %arg0, %c0_i32 : i32, i32
  }
  func.func @transform_6(%arg0: i32) -> (i32, i32, i32) {
    %c0_i32 = arith.constant 0 : i32
    %c0_i32_0 = arith.constant 0 : i32
    %c0_i32_1 = arith.constant 0 : i32
    return %arg0, %c0_i32, %c0_i32_0 : i32, i32, i32
  }
}

</mosaic_0001>

<bundles_post_ra>
// kernel: tpu_custom_call.1
= control target key start
LH: loop header
LB: loop body
LE: loop exit
PB: predicated region body
PF: predicated region fallthrough
CT: control target
= control target key end

     0   :  { %11 = vsyncpa [#allocation7], 0  ;;  %s2039_s0 = inlined_call_operand.vmem [shape: f32[3,32,16], index: 0, kind: input, shape index: {}]   ;;  %s2040_s1 = inlined_call_operand.vmem [shape: f32[3,32,16], index: 1, kind: input, shape index: {}]   ;;  %s2041_s2 = inlined_call_operand.vmem [shape: f32[3,32,16], index: 2, kind: input, shape index: {}]   ;;  %s2042_s3 = inlined_call_operand.vmem [shape: f32[3,32,16], index: 3, kind: input, shape index: {}]   ;;  %s2043_s4 = inlined_call_operand.vmem [shape: f32[32,16], index: 4, kind: input, shape index: {}]   ;;  %s2044_s5 = inlined_call_operand.vmem [shape: f32[32,16], index: 5, kind: input, shape index: {}]   ;;  %s2045_s6 = inlined_call_operand.hbm [shape: f32[2,8,128], index: 6, kind: output, shape index: {}]  }
   0x1   :  { %13 = vsyncpa [#allocation7 + $0x1], 0  ;;  %s1555_s21 = smov 0   ;;  %s1557_s22 = smov 0  }
   0x2   :  { %s1559_s23 = smov 0   ;;  %s1561_s24 = smov 0  }
   0x3 LB: > { %s1576_s25 = sadd.s32 4294967295, %s1515_s24   ;;  %s1344_s26 = sadd.s32 4294967294, %s1515_s24   ;;  %s1515_s24 = sphi %s1561_s24, %s2054_s24   ;;  %s1511_s23 = sphi %s1559_s23, %s2053_s23   ;;  %s1507_s22 = sphi %s1557_s22, %s2052_s22   ;;  %s1503_s21 = sphi %s1555_s21, %s2051_s21  }
   0x4   : > { %s1580_s27 = sadd.s32 1, %s1515_s24   ;;  %s26_s28 = sadd.s32 1, %s1511_s23 }
   0x5   : > { %s23_s29 = ssub.s32 %s1515_s24, %s1580_s27  ;;  %p33_p0 = scmp.ne.s32.totalorder %s1511_s23, %s1507_s22 }
   0x6   : > { %p24_p1 = scmp.eq.s32.totalorder %s23_s29, 0  ;;  %p34_p2 = scmp.eq.s32.totalorder %s1515_s24, 0 }
   0x7   : > { %p193_p3 = scmp.eq.s32.totalorder %s1576_s25, 1  ;;  %p198_p4 = scmp.ne.s32.totalorder %s1507_s22, %s1503_s21 }
   0x8   : > { %s1592_s30 = scalar_select %p24_p1, %s1511_s23, %s26_s28  }
   0x9   : > { %p1594_p5 = por %p34_p2, %p33_p0  ;;  %p1598_p6 = por %p193_p3, %p33_p0 }
   0xa   : > { %p199_p7 = scmp.eq.s32.totalorder %s1344_s26, 1  ;;  %p1346_p9 = scmp.ge.s32.totalorder %s1515_s24, 2 }
   0xc   : > { %p1602_p8 = por %p199_p7, %p198_p4  ;;  %215 = sbr.rel (%p1346_p9) target bundleno = 47 (0x2f), region = 16 }
  0x13   : > { %218 = sbr.rel (!%p1594_p5) target bundleno = 26 (0x1a), region = 20  ;;  %s220_s10 = sand.u32 (%p1594_p5), 1, %s1511_s23  }
  0x14   : > { %s1365_s11 = sshll.u32 (%p1594_p5), %s1515_s24, 4  ;;  %s1369_s12 = smul.u32 (%p1594_p5), 48, %s220_s10 }
  0x15   : > { %s225_s15 = scalar_lea.vmem (%p1594_p5), %s2039_s0, %s1365_s11 }
  0x16   : > { %v263_v0 = vld [vmem:[%s225_s15] sm:$0xff] (%p1594_p5)  ;;  %v265_v1 = vld [vmem:[%s225_s15 + $0x8] sm:$0xff] (%p1594_p5)  ;;  %s222_s16 = scalar_lea.vmem (%p1594_p5), [#allocation2], %s1369_s12 }
  0x17   : > { %v267_v2 = vld [vmem:[%s225_s15 + $0x20] sm:$0xff] (%p1594_p5)  ;;  %v269_v3 = vld [vmem:[%s225_s15 + $0x28] sm:$0xff] (%p1594_p5)  ;;  %264 = vst [vmem:[%s222_s16] sm:$0xff] (%p1594_p5), %v263_v0  ;;  %266 = vst [vmem:[%s222_s16 + $0x8] sm:$0xff] (%p1594_p5), %v265_v1 }
  0x18   : > { %v271_v4 = vld [vmem:[%s225_s15 + $0x40] sm:$0xff] (%p1594_p5)  ;;  %v273_v5 = vld [vmem:[%s225_s15 + $0x48] sm:$0xff] (%p1594_p5)  ;;  %268 = vst [vmem:[%s222_s16 + $0x10] sm:$0xff] (%p1594_p5), %v267_v2  ;;  %270 = vst [vmem:[%s222_s16 + $0x18] sm:$0xff] (%p1594_p5), %v269_v3 }
  0x19   : > { %272 = vst [vmem:[%s222_s16 + $0x20] sm:$0xff] (%p1594_p5), %v271_v4  ;;  %274 = vst [vmem:[%s222_s16 + $0x28] sm:$0xff] (%p1594_p5), %v273_v5 }
  0x1a PF: > { %280 = sbr.rel (!%p1594_p5) target bundleno = 33 (0x21), region = 58  ;;  %s282_s17 = sand.u32 (%p1594_p5), 1, %s1511_s23  }
  0x1b   : > { %s1366_s18 = sshll.u32 (%p1594_p5), %s1515_s24, 4  ;;  %s1370_s19 = smul.u32 (%p1594_p5), 48, %s282_s17 }
  0x1c   : > { %s287_s28 = scalar_lea.vmem (%p1594_p5), %s2040_s1, %s1366_s18 }
  0x1d   : > { %v325_v6 = vld [vmem:[%s287_s28] sm:$0xff] (%p1594_p5)  ;;  %v327_v7 = vld [vmem:[%s287_s28 + $0x8] sm:$0xff] (%p1594_p5)  ;;  %s284_s29 = scalar_lea.vmem (%p1594_p5), [#allocation3], %s1370_s19 }
  0x1e   : > { %v329_v8 = vld [vmem:[%s287_s28 + $0x20] sm:$0xff] (%p1594_p5)  ;;  %v331_v9 = vld [vmem:[%s287_s28 + $0x28] sm:$0xff] (%p1594_p5)  ;;  %326 = vst [vmem:[%s284_s29] sm:$0xff] (%p1594_p5), %v325_v6  ;;  %328 = vst [vmem:[%s284_s29 + $0x8] sm:$0xff] (%p1594_p5), %v327_v7 }
  0x1f   : > { %v333_v10 = vld [vmem:[%s287_s28 + $0x40] sm:$0xff] (%p1594_p5)  ;;  %v335_v11 = vld [vmem:[%s287_s28 + $0x48] sm:$0xff] (%p1594_p5)  ;;  %330 = vst [vmem:[%s284_s29 + $0x10] sm:$0xff] (%p1594_p5), %v329_v8  ;;  %332 = vst [vmem:[%s284_s29 + $0x18] sm:$0xff] (%p1594_p5), %v331_v9 }
  0x20   : > { %334 = vst [vmem:[%s284_s29 + $0x20] sm:$0xff] (%p1594_p5), %v333_v10  ;;  %336 = vst [vmem:[%s284_s29 + $0x28] sm:$0xff] (%p1594_p5), %v335_v11 }
  0x21 PF: > { %342 = sbr.rel (!%p1594_p5) target bundleno = 40 (0x28), region = 96  ;;  %s344_s10 = sand.u32 (%p1594_p5), 1, %s1511_s23  }
  0x22   : > { %s1367_s11 = sshll.u32 (%p1594_p5), %s1515_s24, 4  ;;  %s1371_s12 = smul.u32 (%p1594_p5), 48, %s344_s10 }
  0x23   : > { %s349_s15 = scalar_lea.vmem (%p1594_p5), %s2041_s2, %s1367_s11 }
  0x24   : > { %v387_v12 = vld [vmem:[%s349_s15] sm:$0xff] (%p1594_p5)  ;;  %v389_v13 = vld [vmem:[%s349_s15 + $0x8] sm:$0xff] (%p1594_p5)  ;;  %s346_s16 = scalar_lea.vmem (%p1594_p5), [#allocation4], %s1371_s12 }
  0x25   : > { %v391_v14 = vld [vmem:[%s349_s15 + $0x20] sm:$0xff] (%p1594_p5)  ;;  %v393_v15 = vld [vmem:[%s349_s15 + $0x28] sm:$0xff] (%p1594_p5)  ;;  %388 = vst [vmem:[%s346_s16] sm:$0xff] (%p1594_p5), %v387_v12  ;;  %390 = vst [vmem:[%s346_s16 + $0x8] sm:$0xff] (%p1594_p5), %v389_v13 }
  0x26   : > { %v395_v16 = vld [vmem:[%s349_s15 + $0x40] sm:$0xff] (%p1594_p5)  ;;  %v397_v17 = vld [vmem:[%s349_s15 + $0x48] sm:$0xff] (%p1594_p5)  ;;  %392 = vst [vmem:[%s346_s16 + $0x10] sm:$0xff] (%p1594_p5), %v391_v14  ;;  %394 = vst [vmem:[%s346_s16 + $0x18] sm:$0xff] (%p1594_p5), %v393_v15 }
  0x27   : > { %396 = vst [vmem:[%s346_s16 + $0x20] sm:$0xff] (%p1594_p5), %v395_v16  ;;  %398 = vst [vmem:[%s346_s16 + $0x28] sm:$0xff] (%p1594_p5), %v397_v17 }
  0x28 PF: > { %404 = sbr.rel (!%p1594_p5) target bundleno = 47 (0x2f), region = 134  ;;  %s406_s17 = sand.u32 (%p1594_p5), 1, %s1511_s23  }
  0x29   : > { %s1368_s18 = sshll.u32 (%p1594_p5), %s1515_s24, 4  ;;  %s1372_s19 = smul.u32 (%p1594_p5), 48, %s406_s17 }
  0x2a   : > { %s411_s28 = scalar_lea.vmem (%p1594_p5), %s2042_s3, %s1368_s18 }
  0x2b   : > { %v449_v18 = vld [vmem:[%s411_s28] sm:$0xff] (%p1594_p5)  ;;  %v451_v19 = vld [vmem:[%s411_s28 + $0x8] sm:$0xff] (%p1594_p5)  ;;  %s408_s29 = scalar_lea.vmem (%p1594_p5), [#allocation5], %s1372_s19 }
  0x2c   : > { %v453_v20 = vld [vmem:[%s411_s28 + $0x20] sm:$0xff] (%p1594_p5)  ;;  %v455_v21 = vld [vmem:[%s411_s28 + $0x28] sm:$0xff] (%p1594_p5)  ;;  %450 = vst [vmem:[%s408_s29] sm:$0xff] (%p1594_p5), %v449_v18  ;;  %452 = vst [vmem:[%s408_s29 + $0x8] sm:$0xff] (%p1594_p5), %v451_v19 }
  0x2d   : > { %v457_v22 = vld [vmem:[%s411_s28 + $0x40] sm:$0xff] (%p1594_p5)  ;;  %v459_v23 = vld [vmem:[%s411_s28 + $0x48] sm:$0xff] (%p1594_p5)  ;;  %454 = vst [vmem:[%s408_s29 + $0x10] sm:$0xff] (%p1594_p5), %v453_v20  ;;  %456 = vst [vmem:[%s408_s29 + $0x18] sm:$0xff] (%p1594_p5), %v455_v21 }
  0x2e   : > { %458 = vst [vmem:[%s408_s29 + $0x20] sm:$0xff] (%p1594_p5), %v457_v22  ;;  %460 = vst [vmem:[%s408_s29 + $0x28] sm:$0xff] (%p1594_p5), %v459_v23 }
  0x2f PF: > { %p1355_p10 = scmp.ge.s32.totalorder %s1515_s24, 1  ;;  %p483_p11 = scmp.lt.s32.totalorder %s1515_s24, 3 }
  0x31   : > { %p484_p12 = pnand %p1355_p10, %p483_p11 }
  0x32   : > { %s1357_s7 = sshll.u32 (!%p484_p12), %s1576_s25, 1  ;;  %s1641_s10 = sand.u32 (!%p484_p12), 1, %s1507_s22   ;;  %vm767_vm0 = vcmask (!%p484_p12), 1047680   ;;  %vm656_vm1 = vcmask (!%p484_p12), 130048  }
  0x33   : > { %487 = sbr.rel (%p484_p12) target bundleno = 680 (0x2a8), region = 180  ;;  %p567_p13 = scmp.lt.s32.totalorder (!%p484_p12), %s1357_s7, 3 }
  0x34   : > { %s1644_s11 = smul.u32 (!%p484_p12), 48, %s1641_s10  ;;  %s1517_s20 = smov (!%p484_p12), 16  }
  0x35   : > { %s1518_s28 = smov (!%p484_p12), 127  }
  0x36   : > { %s506_s13 = scalar_lea.vmem (!%p484_p12), [#allocation4], %s1644_s11  ;;  %s513_s26 = scalar_lea.vmem (!%p484_p12), [#allocation5], %s1644_s11 }
  0x37   : > { %v1647_v24 = vld [vmem:[%s506_s13 + $0x8] sm:$0xff] (!%p484_p12)  ;;  %v1649_v25 = vld [vmem:[%s506_s13 + $0x18] sm:$0xff] (!%p484_p12)  ;;  %v1674_v35 = vld [vmem:[%s506_s13] sm:$0xff] (!%p484_p12)  ;;  %s1756_s29 = scalar_lea.vmem (!%p484_p12), [#allocation2], %s1644_s11 }
  0x38   : > { %v1651_v26 = vld [vmem:[%s506_s13 + $0x28] sm:$0xff] (!%p484_p12)  ;;  %v748_v27 = vmul.f32 (!%p484_p12), 0.2989, %v1647_v24  ;;  %v750_v28 = vmul.f32 (!%p484_p12), 0.587, %v1649_v25  ;;  %v1676_v36 = vld [vmem:[%s506_s13 + $0x10] sm:$0xff] (!%p484_p12) }
  0x39   : > { %v754_v34 = vmul.f32 (!%p484_p12), 0.114, %v1651_v26  ;;  %v1678_v37 = vld [vmem:[%s506_s13 + $0x20] sm:$0xff] (!%p484_p12)  ;;  %v747_v38 = vmul.f32 (!%p484_p12), 0.2989, %v1674_v35  ;;  %v1682_v39 = vld [vmem:[%s513_s26 + $0x8] sm:$0xff] (!%p484_p12) }
  0x3a   : > { %s2056_s7 = smov (!%p567_p13, %s1357_s7), 3  ;;  %v752_v33 = vadd.f32 %v750_v28, %v748_v27  ;;  %v749_v40 = vmul.f32 0.587, %v1676_v36  ;;  %v753_v41 = vmul.f32 0.114, %v1678_v37  ;;  %v1686_v42 = vld [vmem:[%s513_s26 + $0x18] sm:$0xff] }
  0x3b   : > { %s1358_s12 = sshll.u32 %s2056_s7, 3  ;;  %v1688_v43 = vld [vmem:[%s513_s26 + $0x28] sm:$0xff]  ;;  %v758_v44 = vmul.f32 0.2989, %v1682_v39  ;;  %v760_v45 = vmul.f32 0.587, %v1686_v42 }
  0x3c   : > { %s570_s16 = scalar_lea.vmem %s2043_s4, %s1358_s12  ;;  %s576_s19 = scalar_lea.vmem %s2044_s5, %s1358_s12  ;;  %v1696_v46 = vadd.f32 %v754_v34, %v752_v33  ;;  %v751_v47 = vadd.f32 %v749_v40, %v747_v38  ;;  %v764_v48 = vmul.f32 0.114, %v1688_v43  ;;  %v1699_v49 = vld [vmem:[%s513_s26] sm:$0xff]  ;;  %v1701_v50 = vld [vmem:[%s513_s26 + $0x10] sm:$0xff]  ;;  %v615_v19 = vld [vmem:[%s1756_s29 + $0x8] sm:$0xff] }
  0x3d   : > { %v1661_v29 = vld [vmem:[%s570_s16] sm:$0xff]  ;;  %v1665_v31 = vld [vmem:[%s570_s16 + $0x8] sm:$0xff]  ;;  %v762_v51 = vadd.f32 %v760_v45, %v758_v44  ;;  %v757_v53 = vmul.f32 0.2989, %v1699_v49  ;;  %v759_v54 = vmul.f32 0.587, %v1701_v50 }
  0x3e   : > { %v1663_v30 = vld [vmem:[%s576_s19] sm:$0xff]  ;;  %768 = vrot.lane.b32.xlu0 %v1661_v29, %s1517_s20  ;;  %v1671_v32 = vld [vmem:[%s576_s19 + $0x8] sm:$0xff]  ;;  %v1707_v55 = vadd.f32 %v753_v41, %v751_v47  ;;  %v639_v33 = vmul.f32 %v615_v19, %v1665_v31  ;;  %s1780_s7 = scalar_lea.vmem [#allocation3], %s1644_s11 }
  0x3f   : > { %859 = vrot.lane.b32.xlu1 %v1663_v30, %s1517_s20  ;;  %v1703_v52 = vld [vmem:[%s513_s26 + $0x20] sm:$0xff]  ;;  %v761_v57 = vadd.f32 %v759_v54, %v757_v53  ;;  %v1714_v58 = vadd.f32 %v764_v48, %v762_v51  ;;  %v616_v28 = vld [vmem:[%s1756_s29 + $0x10] sm:$0xff]  ;;  %v617_v47 = vld [vmem:[%s1756_s29 + $0x18] sm:$0xff] }
  0x40   : > { %v763_v56 = vmul.f32 0.114, %v1703_v52  ;;  %v614_v18 = vld [vmem:[%s1756_s29] sm:$0xff]  ;;  %v640_v44 = vmul.f32 %v616_v28, %v1661_v29  ;;  %v645_v48 = vsub.f32 %v639_v33, %v1647_v24  ;;  %v621_v54 = vld [vmem:[%s1780_s7 + $0x8] sm:$0xff] }
  0x41   : > { %v638_v27 = vmul.f32 %v614_v18, %v1661_v29  ;;  %v620_v53 = vld [vmem:[%s1780_s7] sm:$0xff] }
  0x42   : > { %771 = vrot.lane.b32.xlu0 %v1665_v31, %s1517_s20  ;;  %v1716_v59 = vadd.f32 %v763_v56, %v761_v57  ;;  %v646_v57 = vsub.f32 %v640_v44, %v1676_v36  ;;  %v618_v24 = vld [vmem:[%s1756_s29 + $0x20] sm:$0xff] }
  0x43   : > { %862 = vrot.lane.b32.xlu1 %v1671_v32, %s1517_s20  ;;  %v644_v45 = vsub.f32 %v638_v27, %v1674_v35  ;;  %v641_v35 = vmul.f32 %v617_v47, %v1665_v31 }
  0x44   : > { %v652_v36 = vand.u32 2147483647, %v646_v57 }
  0x46   : > { %949 = vrot.lane.b32.xlu0 %v1707_v55, %s1517_s20 }
  0x47   : > { %952 = vrot.lane.b32.xlu1 %v1696_v46, %s1517_s20 }
  0x4a   : > { %1039 = vrot.lane.b32.xlu0 %v1716_v59, %s1517_s20 }
  0x4b   : > { %1042 = vrot.lane.b32.xlu1 %v1714_v58, %s1517_s20 }
  0xb0   : > { %v769_v60 = vpop.permute.xlu0 %768 }
  0xb1   : > { %v860_v61 = vpop.permute.xlu1 %859  ;;  %v770_v62 = vsel %vm767_vm0, %v769_v60, %v1661_v29  ;;  %v650_v60 = vand.u32 2147483647, %v644_v45 }
  0xb2   : > { %774 = vrot.lane.b32.xlu0 %v770_v62, %s1517_s20  ;;  %v861_v63 = vsel %vm767_vm0, %v860_v61, %v1663_v30  ;;  %v651_v61 = vand.u32 2147483647, %v645_v48  ;;  %v715_v62 = vsub.f32 %v614_v18, %v620_v53  ;;  %v660_v18 = vsel %vm656_vm1, %v652_v36, 0.0 }
  0xb4   : > { %v772_v0 = vpop.permute.xlu0 %771 }
  0xb5   : > { %v863_v1 = vpop.permute.xlu1 %862  ;;  %v773_v2 = vsel %vm767_vm0, %v772_v0, %v1665_v31  ;;  %v677_v0 = vmul.f32 %v620_v53, %v1663_v30 }
  0xb6   : > { %776 = vrot.lane.b32.xlu1 %v773_v2, %s1517_s20  ;;  %865 = vrot.lane.b32.xlu0 %v861_v63, %s1517_s20  ;;  %v864_v3 = vsel %vm767_vm0, %v863_v1, %v1671_v32  ;;  %v716_v63 = vsub.f32 %v615_v19, %v621_v54  ;;  %v678_v1 = vmul.f32 %v621_v54, %v1671_v32  ;;  %v622_v2 = vld [vmem:[%s1780_s7 + $0x10] sm:$0xff]  ;;  %v624_v19 = vld [vmem:[%s1780_s7 + $0x20] sm:$0xff] }
  0xb7   : > { %v719_v44 = vsub.f32 %v618_v24, %v624_v19  ;;  %v625_v54 = vld [vmem:[%s1780_s7 + $0x28] sm:$0xff] }
  0xb8   : > { %v950_v5 = vpop.permute.xlu0 %949 }
  0xb9   : > { %v953_v4 = vpop.permute.xlu1 %952  ;;  %v951_v6 = vsel %vm767_vm0, %v950_v5, %v1707_v55  ;;  %v647_v5 = vsub.f32 %v641_v35, %v1649_v25 }
  0xba   : > { %867 = vrot.lane.b32.xlu1 %v864_v3, %s1517_s20  ;;  %955 = vrot.lane.b32.xlu0 %v951_v6, %s1517_s20  ;;  %v954_v7 = vsel %vm767_vm0, %v953_v4, %v1696_v46  ;;  %v619_v3 = vld [vmem:[%s1756_s29 + $0x28] sm:$0xff]  ;;  %v642_v4 = vmul.f32 %v618_v24, %v1661_v29  ;;  %v657_v6 = vsel %vm656_vm1, %v650_v60, 0.0 }
  0xbc   : > { %v1040_v9 = vpop.permute.xlu0 %1039  ;;  %v648_v25 = vsub.f32 %v642_v4, %v1678_v37  ;;  %v681_v37 = vmul.f32 %v624_v19, %v1663_v30 }
  0xbd   : > { %v1043_v8 = vpop.permute.xlu1 %1042  ;;  %v1041_v10 = vsel %vm767_vm0, %v1040_v9, %v1716_v59  ;;  %v721_v9 = vand.u32 2147483647, %v715_v62  ;;  %v725_v62 = vand.u32 2147483647, %v719_v44 }
  0xbe   : > { %957 = vrot.lane.b32.xlu1 %v954_v7, %s1517_s20  ;;  %1045 = vrot.lane.b32.xlu0 %v1041_v10, %s1517_s20  ;;  %v1044_v11 = vsel %vm767_vm0, %v1043_v8, %v1714_v58  ;;  %v658_v7 = vsel %vm656_vm1, %v651_v61, 0.0  ;;  %v717_v8 = vsub.f32 %v616_v28, %v622_v2  ;;  %v722_v10 = vand.u32 2147483647, %v716_v63 }
  0xbf   : > { %v720_v61 = vsub.f32 %v619_v3, %v625_v54  ;;  %v682_v63 = vmul.f32 %v625_v54, %v1671_v32 }
  0xc2   : > { %1047 = vrot.lane.b32.xlu1 %v1044_v11, %s1517_s20  ;;  %v679_v11 = vmul.f32 %v622_v2, %v1663_v30 }
 0x124   : > { %v775_v12 = vpop.permute.xlu0 %774 }
 0x125   : > { %v778_v13 = vsel %vm767_vm0, %v775_v12, %v1661_v29  ;;  %v683_v12 = vsub.f32 %v677_v0, %v1699_v49 }
 0x126   : > { %782 = vrot.lane.b32.xlu0 %v778_v13, %s1518_s28  ;;  %v684_v13 = vsub.f32 %v678_v1, %v1682_v39  ;;  %v685_v39 = vsub.f32 %v679_v11, %v1701_v50 }
 0x127   : > { %v689_v27 = vand.u32 2147483647, %v683_v12 }
 0x128   : > { %v777_v14 = vpop.permute.xlu1 %776  ;;  %v866_v15 = vpop.permute.xlu0 %865  ;;  %v690_v28 = vand.u32 2147483647, %v684_v13 }
 0x129   : > { %v779_v16 = vsel %vm767_vm0, %v777_v14, %v1665_v31  ;;  %v869_v17 = vsel %vm767_vm0, %v866_v15, %v1663_v30  ;;  %v643_v14 = vmul.f32 %v619_v3, %v1665_v31  ;;  %v623_v15 = vld [vmem:[%s1780_s7 + $0x18] sm:$0xff]  ;;  %v695_v50 = vsel %vm656_vm1, %v689_v27, 0.0 }
 0x12a   : > { %784 = vrot.lane.b32.xlu1 %v779_v16, %s1518_s28  ;;  %873 = vrot.lane.b32.xlu0 %v869_v17, %s1518_s28  ;;  %v653_v16 = vand.u32 2147483647, %v647_v5  ;;  %v659_v17 = vadd.f32 %v658_v7, %v657_v6  ;;  %v680_v49 = vmul.f32 %v623_v15, %v1671_v32  ;;  %v696_v53 = vsel %vm656_vm1, %v690_v28, 0.0 }
 0x12b   : > { %v649_v33 = vsub.f32 %v643_v14, %v1651_v26  ;;  %v697_v60 = vadd.f32 %v696_v53, %v695_v50  ;;  %v726_v6 = vand.u32 2147483647, %v720_v61  ;;  %v734_v7 = vsel %vm656_vm1, %v725_v62, 0.0 }
 0x12c   : > { %v868_v20 = vpop.permute.xlu1 %867  ;;  %v956_v21 = vpop.permute.xlu0 %955  ;;  %v686_v48 = vsub.f32 %v680_v49, %v1686_v42  ;;  %v687_v42 = vsub.f32 %v681_v37, %v1703_v52  ;;  %v688_v3 = vsub.f32 %v682_v63, %v1688_v43  ;;  %v578_v43 = vlaneseq }
 0x12d   : > { %v870_v22 = vsel %vm767_vm0, %v868_v20, %v1671_v32  ;;  %v959_v23 = vsel %vm767_vm0, %v956_v21, %v1707_v55  ;;  %v718_v20 = vsub.f32 %v617_v47, %v623_v15  ;;  %v723_v21 = vand.u32 2147483647, %v717_v8 }
 0x12e   : > { %875 = vrot.lane.b32.xlu1 %v870_v22, %s1518_s28  ;;  %963 = vrot.lane.b32.xlu0 %v959_v23, %s1518_s28  ;;  %v727_v22 = vsel %vm656_vm1, %v721_v9, 0.0  ;;  %v728_v23 = vsel %vm656_vm1, %v722_v10, 0.0  ;;  %v692_v0 = vand.u32 2147483647, %v686_v48  ;;  %v693_v8 = vand.u32 2147483647, %v687_v42 }
 0x12f   : > { %v724_v45 = vand.u32 2147483647, %v718_v20  ;;  %v730_v47 = vsel %vm656_vm1, %v723_v21, 0.0  ;;  %v736_v52 = vsel %vm656_vm1, %v726_v6, 0.0  ;;  %v694_v13 = vand.u32 2147483647, %v688_v3 }
 0x130   : > { %v958_v34 = vpop.permute.xlu1 %957  ;;  %v1046_v38 = vpop.permute.xlu0 %1045  ;;  %v700_v9 = vsel %vm656_vm1, %v692_v0, 0.0  ;;  %v702_v14 = vsel %vm656_vm1, %v693_v8, 0.0  ;;  %v1832_v19 = vand.u32 127, %v578_v43  ;;  %v791_v49 = vrot.slane %v1665_v31, 1 }
 0x131   : > { %v960_v40 = vsel %vm767_vm0, %v958_v34, %v1696_v46  ;;  %v1049_v41 = vsel %vm767_vm0, %v1046_v38, %v1716_v59  ;;  %v654_v34 = vand.u32 2147483647, %v648_v25  ;;  %v661_v38 = vadd.f32 %v660_v18, %v659_v17 }
 0x132   : > { %965 = vrot.lane.b32.xlu1 %v960_v40, %s1518_s28  ;;  %1053 = vrot.lane.b32.xlu0 %v1049_v41, %s1518_s28  ;;  %v729_v40 = vadd.f32 %v728_v23, %v727_v22  ;;  %v662_v41 = vsel %vm656_vm1, %v653_v16, 0.0  ;;  %v732_v24 = vsel %vm656_vm1, %v724_v45, 0.0  ;;  %v704_v16 = vsel %vm656_vm1, %v694_v13, 0.0 }
 0x133   : > { %v663_v35 = vadd.f32 %v662_v41, %v661_v38  ;;  %v664_v26 = vsel %vm656_vm1, %v654_v34, 0.0  ;;  %v1830_v18 = vshrl.u32 %v578_v43, 7  ;;  %vm583_vm2 = vcmp.ne.s32.totalorder %v1832_v19, 15 }
 0x134   : > { %v1048_v51 = vpop.permute.xlu1 %1047  ;;  %v731_v57 = vadd.f32 %v730_v47, %v729_v40  ;;  %v790_v23 = vrot.slane %v1661_v29, 1  ;;  %v881_v29 = vrot.slane %v1663_v30, 1  ;;  %v882_v31 = vrot.slane %v1671_v32, 1 }
 0x135   : > { %v1050_v56 = vsel %vm767_vm0, %v1048_v51, %v1714_v58  ;;  %v691_v51 = vand.u32 2147483647, %v685_v39  ;;  %v665_v2 = vadd.f32 %v664_v26, %v663_v35  ;;  %v582_v20 = vadd.s32 8, %v1830_v18 }
 0x136   : > { %1055 = vrot.lane.b32.xlu1 %v1050_v56, %s1518_s28  ;;  %v655_v56 = vand.u32 2147483647, %v649_v33  ;;  %v733_v4 = vadd.f32 %v732_v24, %v731_v57  ;;  %vm792_vm3 = vcmp.lt.s32.totalorder %v1830_v18, 7  ;;  %v972_v45 = vrot.slane %v1696_v46, 1 }
 0x137   : > { %v698_v1 = vsel %vm656_vm1, %v691_v51, 0.0  ;;  %v595_v22 = vand.u32 15, %v582_v20  ;;  %v794_v28 = vsel %vm792_vm3, %v791_v49, %v790_v23  ;;  %v971_v47 = vrot.slane %v1707_v55, 1 }
 0x138   : > { %v666_v5 = vsel %vm656_vm1, %v655_v56, 0.0  ;;  %v699_v36 = vadd.f32 %v698_v1, %v697_v60  ;;  %v735_v11 = vadd.f32 %v734_v7, %v733_v4  ;;  %v793_v53 = vsel %vm792_vm3, %v790_v23, %v791_v49 }
 0x139   : > { %v667_v10 = vadd.f32 %v666_v5, %v665_v2  ;;  %vm1841_vm4 = vcmp.ne.s32.totalorder %v595_v22, 15  ;;  %v884_v55 = vsel %vm792_vm3, %v882_v31, %v881_v29  ;;  %v883_v61 = vsel %vm792_vm3, %v881_v29, %v882_v31 }
 0x13a   : > { %v701_v12 = vadd.f32 %v700_v9, %v699_v36  ;;  %v737_v15 = vadd.f32 %v736_v52, %v735_v11  ;;  %v796_v44 = vsel %vm1841_vm4, %v794_v28, 0.0  ;;  %v973_v62 = vsel %vm792_vm3, %v971_v47, %v972_v45 }
 0x13b   : > { %v886_v4 = vsel %vm1841_vm4, %v884_v55, 0.0  ;;  %v974_v7 = vsel %vm792_vm3, %v972_v45, %v971_v47  ;;  %v1061_v13 = vrot.slane %v1716_v59, 1  ;;  %v1062_v43 = vrot.slane %v1714_v58, 1 }
 0x13c   : > { %v703_v25 = vadd.f32 %v702_v14, %v701_v12  ;;  %v976_v59 = vsel %vm1841_vm4, %v974_v7, 0.0  ;;  %vm1129_vm5 = vcmp.eq.s32.totalorder %v1832_v19, 0  ;;  %vm1132_vm6 = vcmp.eq.s32.totalorder %v1832_v19, 1 }
 0x13d   : > { %vm1135_vm7 = vcmp.eq.s32.totalorder %v1832_v19, 2  ;;  %vm1138_vm8 = vcmp.eq.s32.totalorder %v1832_v19, 3  ;;  %vm1141_vm9 = vcmp.eq.s32.totalorder %v1832_v19, 4  ;;  %vm1144_vm10 = vcmp.eq.s32.totalorder %v1832_v19, 5 }
 0x13e   : > { %v705_v17 = vadd.f32 %v704_v16, %v703_v25  ;;  %vm1147_vm11 = vcmp.eq.s32.totalorder %v1832_v19, 6  ;;  %vm1150_vm12 = vcmp.eq.s32.totalorder %v1832_v19, 7  ;;  %vm1153_vm13 = vcmp.eq.s32.totalorder %v1832_v19, 8 }
 0x13f   : > { %vm1156_vm14 = vcmp.eq.s32.totalorder %v1832_v19, 9  ;;  %vm1159_vm15 = vcmp.eq.s32.totalorder %v1832_v19, 10  ;;  %vm1162_vm0 = vcmp.eq.s32.totalorder %v1832_v19, 11 }
 0x151   : > { %668 = vadd.xlane.f32.xlu0 %v667_v10 }
 0x155   : > { %738 = vadd.xlane.f32.xlu0 %v737_v15 }
 0x15a   : > { %706 = vadd.xlane.f32.xlu1 %v705_v17 }
 0x198   : > { %v783_v21 = vpop.permute.xlu0 %782 }
 0x199   : > { %v788_v39 = vsel %vm583_vm2, %v783_v21, 0.0 }
 0x19a   : > { %v797_v40 = vrot.slane %v788_v39, 1 }
 0x19c   : > { %v785_v37 = vpop.permute.xlu1 %784  ;;  %v874_v33 = vpop.permute.xlu0 %873 }
 0x19d   : > { %v789_v34 = vsel %vm583_vm2, %v785_v37, 0.0  ;;  %v879_v38 = vsel %vm583_vm2, %v874_v33, 0.0 }
 0x19e   : > { %v798_v41 = vrot.slane %v789_v34, 1  ;;  %v887_v50 = vrot.slane %v879_v38, 1 }
 0x1a0   : > { %v800_v48 = vsel %vm792_vm3, %v798_v41, %v797_v40  ;;  %v876_v51 = vpop.permute.xlu1 %875  ;;  %v964_v30 = vpop.permute.xlu0 %963  ;;  %v799_v32 = vsel %vm792_vm3, %v797_v40, %v798_v41 }
 0x1a1   : > { %v802_v54 = vsel %vm1841_vm4, %v800_v48, 0.0  ;;  %v880_v46 = vsel %vm583_vm2, %v876_v51, 0.0  ;;  %v807_v56 = vsub.f32 %v799_v32, %v788_v39  ;;  %v969_v60 = vsel %vm583_vm2, %v964_v30, 0.0 }
 0x1a2   : > { %v804_v35 = vsub.f32 %v802_v54, %v796_v44  ;;  %v808_v26 = vsub.f32 %v802_v54, %v789_v34  ;;  %v888_v57 = vrot.slane %v880_v46, 1  ;;  %v803_v63 = vsub.f32 %v799_v32, %v793_v53 }
 0x1a3   : > { %v809_v24 = vand.u32 2147483647, %v807_v56  ;;  %v977_v36 = vrot.slane %v969_v60, 1  ;;  %v1063_v48 = vsel %vm792_vm3, %v1061_v13, %v1062_v43 }
 0x1a4   : > { %v806_v42 = vand.u32 2147483647, %v804_v35  ;;  %v810_v0 = vand.u32 2147483647, %v808_v26  ;;  %v889_v1 = vsel %vm792_vm3, %v887_v50, %v888_v57  ;;  %v966_v2 = vpop.permute.xlu1 %965  ;;  %v805_v9 = vand.u32 2147483647, %v803_v63  ;;  %v1054_v14 = vpop.permute.xlu0 %1053 }
 0x1a5   : > { %v1881_v5 = vsel %vm583_vm2, %v966_v2, 0.0  ;;  %v823_v6 = vsel %vm656_vm1, %v809_v24, -inf  ;;  %v893_v11 = vsub.f32 %v889_v1, %v883_v61  ;;  %v897_v12 = vsub.f32 %v889_v1, %v879_v38 }
 0x1a6   : > { %v978_v3 = vrot.slane %v1881_v5, 1  ;;  %v824_v8 = vsel %vm656_vm1, %v810_v0, -inf  ;;  %v812_v10 = vsel %vm656_vm1, %v806_v42, -inf  ;;  %v811_v15 = vsel %vm656_vm1, %v805_v9, -inf }
 0x1a7   : > { %v825_v52 = vmax.f32 %v823_v6, %v824_v8  ;;  %v847_v25 = vsel %vm656_vm1, %v809_v24, inf  ;;  %v848_v16 = vsel %vm656_vm1, %v810_v0, inf  ;;  %v890_v20 = vsel %vm792_vm3, %v888_v57, %v887_v50 }
 0x1a8   : > { %v1056_v17 = vpop.permute.xlu1 %1055  ;;  %v979_v21 = vsel %vm792_vm3, %v977_v36, %v978_v3  ;;  %v813_v22 = vmax.f32 %v811_v15, %v812_v10  ;;  %v835_v23 = vsel %vm656_vm1, %v805_v9, inf  ;;  %v836_v49 = vsel %vm656_vm1, %v806_v42, inf }
 0x1a9   : > { %826 = vmax.xlane.f32.xlu1 %v825_v52  ;;  %v1904_v39 = vsel %vm583_vm2, %v1056_v17, 0.0  ;;  %v1059_v58 = vsel %vm583_vm2, %v1054_v14, 0.0  ;;  %v895_v28 = vand.u32 2147483647, %v893_v11  ;;  %v899_v37 = vand.u32 2147483647, %v897_v12 }
 0x1aa   : > { %v980_v33 = vsel %vm792_vm3, %v978_v3, %v977_v36  ;;  %814 = vmax.xlane.f32.xlu0 %v813_v22  ;;  %v849_v34 = vmin.f32 %v847_v25, %v848_v16  ;;  %v983_v29 = vsub.f32 %v979_v21, %v973_v62  ;;  %v987_v31 = vsub.f32 %v979_v21, %v969_v60 }
 0x1ab   : > { %v837_v38 = vmin.f32 %v835_v23, %v836_v49  ;;  %v892_v40 = vsel %vm1841_vm4, %v890_v20, 0.0  ;;  %v1068_v41 = vrot.slane %v1904_v39, 1  ;;  %v1067_v44 = vrot.slane %v1059_v58, 1 }
 0x1ac   : > { %v898_v45 = vsub.f32 %v892_v40, %v880_v46  ;;  %v894_v47 = vsub.f32 %v892_v40, %v886_v4  ;;  %v982_v51 = vsel %vm1841_vm4, %v980_v33, 0.0  ;;  %v1064_v50 = vsel %vm792_vm3, %v1062_v43, %v1061_v13 }
 0x1ad   : > { %850 = vmin.xlane.f32.xlu1 %v849_v34  ;;  %v913_v32 = vsel %vm656_vm1, %v899_v37, -inf  ;;  %v901_v54 = vsel %vm656_vm1, %v895_v28, -inf  ;;  %v985_v56 = vand.u32 2147483647, %v983_v29  ;;  %v989_v55 = vand.u32 2147483647, %v987_v31 }
 0x1ae   : > { %838 = vmin.xlane.f32.xlu0 %v837_v38  ;;  %v900_v30 = vand.u32 2147483647, %v898_v45  ;;  %v896_v53 = vand.u32 2147483647, %v894_v47  ;;  %v988_v46 = vsub.f32 %v982_v51, %v1881_v5  ;;  %v984_v35 = vsub.f32 %v982_v51, %v976_v59 }
 0x1af   : > { %v1070_v26 = vsel %vm792_vm3, %v1068_v41, %v1067_v44  ;;  %v937_v61 = vsel %vm656_vm1, %v899_v37, inf  ;;  %v1069_v62 = vsel %vm792_vm3, %v1067_v44, %v1068_v41  ;;  %v925_v42 = vsel %vm656_vm1, %v895_v28, inf }
 0x1b0   : > { %v914_v57 = vsel %vm656_vm1, %v900_v30, -inf  ;;  %v902_v60 = vsel %vm656_vm1, %v896_v53, -inf  ;;  %v938_v0 = vsel %vm656_vm1, %v900_v30, inf  ;;  %v926_v1 = vsel %vm656_vm1, %v896_v53, inf }
 0x1b1   : > { %v915_v24 = vmax.f32 %v913_v32, %v914_v57  ;;  %v903_v63 = vmax.f32 %v901_v54, %v902_v60  ;;  %v990_v2 = vand.u32 2147483647, %v988_v46  ;;  %v986_v4 = vand.u32 2147483647, %v984_v35 }
 0x1b2   : > { %v1072_v5 = vsel %vm1841_vm4, %v1070_v26, 0.0  ;;  %v1066_v36 = vsel %vm1841_vm4, %v1064_v50, 0.0  ;;  %v1073_v18 = vsub.f32 %v1069_v62, %v1063_v48  ;;  %v991_v6 = vsel %vm656_vm1, %v985_v56, -inf }
 0x1b3   : > { %916 = vmax.xlane.f32.xlu1 %v915_v24  ;;  %904 = vmax.xlane.f32.xlu0 %v903_v63  ;;  %v992_v7 = vsel %vm656_vm1, %v986_v4, -inf  ;;  %v1077_v3 = vsub.f32 %v1069_v62, %v1059_v58  ;;  %v939_v8 = vmin.f32 %v937_v61, %v938_v0  ;;  %v927_v9 = vmin.f32 %v925_v42, %v926_v1 }
 0x1b4   : > { %v1003_v10 = vsel %vm656_vm1, %v989_v55, -inf  ;;  %v1004_v11 = vsel %vm656_vm1, %v990_v2, -inf  ;;  %v1078_v12 = vsub.f32 %v1072_v5, %v1904_v39  ;;  %v1074_v52 = vsub.f32 %v1072_v5, %v1066_v36 }
 0x1b5   : > { %v993_v13 = vmax.f32 %v991_v6, %v992_v7  ;;  %v1075_v27 = vand.u32 2147483647, %v1073_v18  ;;  %v1079_v15 = vand.u32 2147483647, %v1077_v3  ;;  %v1005_v25 = vmax.f32 %v1003_v10, %v1004_v11 }
 0x1b6   : > { %v1076_v14 = vand.u32 2147483647, %v1074_v52  ;;  %v1027_v16 = vsel %vm656_vm1, %v989_v55, inf  ;;  %v1028_v17 = vsel %vm656_vm1, %v990_v2, inf  ;;  %v1015_v43 = vsel %vm656_vm1, %v985_v56, inf }
 0x1b7   : > { %940 = vmin.xlane.f32.xlu1 %v939_v8  ;;  %928 = vmin.xlane.f32.xlu0 %v927_v9  ;;  %v1016_v20 = vsel %vm656_vm1, %v986_v4, inf  ;;  %v1080_v21 = vand.u32 2147483647, %v1078_v12  ;;  %v1081_v22 = vsel %vm656_vm1, %v1075_v27, -inf  ;;  %v1029_v23 = vmin.f32 %v1027_v16, %v1028_v17 }
 0x1b8   : > { %v1082_v59 = vsel %vm656_vm1, %v1076_v14, -inf  ;;  %v1017_v49 = vmin.f32 %v1015_v43, %v1016_v20  ;;  %v1093_v39 = vsel %vm656_vm1, %v1079_v15, -inf  ;;  %v1117_v33 = vsel %vm656_vm1, %v1079_v15, inf }
 0x1b9   : > { %v1094_v58 = vsel %vm656_vm1, %v1080_v21, -inf  ;;  %v1083_v28 = vmax.f32 %v1081_v22, %v1082_v59  ;;  %v1118_v34 = vsel %vm656_vm1, %v1080_v21, inf  ;;  %v1105_v29 = vsel %vm656_vm1, %v1075_v27, inf }
 0x1ba   : > { %v1095_v37 = vmax.f32 %v1093_v39, %v1094_v58  ;;  %v1106_v31 = vsel %vm656_vm1, %v1076_v14, inf  ;;  %v1119_v38 = vmin.f32 %v1117_v33, %v1118_v34  ;;  %vm1165_vm1 = vcmp.eq.s32.totalorder %v1832_v19, 12 }
 0x1bb   : > { %1006 = vmax.xlane.f32.xlu1 %v1005_v25  ;;  %994 = vmax.xlane.f32.xlu0 %v993_v13  ;;  %v1107_v40 = vmin.f32 %v1105_v29, %v1106_v31  ;;  %vm1168_vm2 = vcmp.eq.s32.totalorder %v1832_v19, 13  ;;  %vm1171_vm3 = vcmp.eq.s32.totalorder %v1832_v19, 14  ;;  %vm1174_vm4 = vcmp.eq.s32.totalorder %v1832_v19, 15 }
 0x1bf   : > { %1030 = vmin.xlane.f32.xlu1 %v1029_v23  ;;  %1018 = vmin.xlane.f32.xlu0 %v1017_v49 }
 0x1c3   : > { %1096 = vmax.xlane.f32.xlu1 %v1095_v37  ;;  %1084 = vmax.xlane.f32.xlu0 %v1083_v28 }
 0x1c7   : > { %1120 = vmin.xlane.f32.xlu1 %v1119_v38  ;;  %1108 = vmin.xlane.f32.xlu0 %v1107_v40 }
 0x1de   : > { %v669_v41 = vpop.xlane.xlu0 %668 }
 0x1df   : > { %v670_v44 = vrot.slane %v669_v41, 4 }
 0x1e1   : > { %v671_v45 = vadd.f32 %v670_v44, %v669_v41 }
 0x1e2   : > { %v739_v47 = vpop.xlane.xlu0 %738 }
 0x1e3   : > { %v672_v48 = vrot.slane %v671_v45, 2  ;;  %v740_v51 = vrot.slane %v739_v47, 4 }
 0x1e5   : > { %v741_v50 = vadd.f32 %v740_v51, %v739_v47  ;;  %v673_v30 = vadd.f32 %v672_v48, %v671_v45 }
 0x1e7   : > { %v707_v32 = vpop.xlane.xlu1 %706  ;;  %v742_v53 = vrot.slane %v741_v50, 2  ;;  %v674_v54 = vrot.slane %v673_v30, 1 }
 0x1e8   : > { %v708_v56 = vrot.slane %v707_v32, 4 }
 0x1e9   : > { %v675_v55 = vadd.f32 %v674_v54, %v673_v30  ;;  %v743_v46 = vadd.f32 %v742_v53, %v741_v50 }
 0x1ea   : > { %v709_v35 = vadd.f32 %v708_v56, %v707_v32 }
 0x1eb   : > { %1374 = vpush %v675_v55  ;;  %v744_v57 = vrot.slane %v743_v46, 1 }
 0x1ec   : > { %v710_v26 = vrot.slane %v709_v35, 2 }
 0x1ed   : > { %v745_v62 = vadd.f32 %v744_v57, %v743_v46 }
 0x1ee   : > { %v711_v60 = vadd.f32 %v710_v26, %v709_v35 }
 0x1f0   : > { %v712_v61 = vrot.slane %v711_v60, 1 }
 0x1f2   : > { %v713_v24 = vadd.f32 %v712_v61, %v711_v60 }
 0x1f4   : > { %1376 = vpush %v713_v24 }
 0x1f5   : > { %1378 = vpush %v745_v62 }
 0x21c   : > { %s1375_s11 = spop %1374 }
 0x225   : > { %s1377_s12 = spop %1376 }
 0x226   : > { %s1379_s13 = spop %1378 }
 0x236   : > { %v827_v63 = vpop.xlane.xlu1 %826 }
 0x237   : > { %v828_v42 = vrot.slane %v827_v63, 4  ;;  %v815_v0 = vpop.xlane.xlu0 %814 }
 0x238   : > { %v816_v2 = vrot.slane %v815_v0, 4 }
 0x239   : > { %v829_v1 = vmax.f32 %v827_v63, %v828_v42 }
 0x23a   : > { %v851_v4 = vpop.xlane.xlu1 %850  ;;  %v817_v36 = vmax.f32 %v815_v0, %v816_v2 }
 0x23b   : > { %v830_v5 = vrot.slane %v829_v1, 2  ;;  %v852_v18 = vrot.slane %v851_v4, 4  ;;  %v839_v6 = vpop.xlane.xlu0 %838 }
 0x23c   : > { %v818_v7 = vrot.slane %v817_v36, 2  ;;  %v840_v8 = vrot.slane %v839_v6, 4 }
 0x23d   : > { %v853_v3 = vmin.f32 %v851_v4, %v852_v18  ;;  %v831_v9 = vmax.f32 %v829_v1, %v830_v5 }
 0x23e   : > { %v841_v11 = vmin.f32 %v839_v6, %v840_v8  ;;  %v819_v12 = vmax.f32 %v817_v36, %v818_v7 }
 0x23f   : > { %v854_v10 = vrot.slane %v853_v3, 2  ;;  %v832_v52 = vrot.slane %v831_v9, 1 }
 0x240   : > { %v842_v13 = vrot.slane %v841_v11, 2  ;;  %v917_v27 = vpop.xlane.xlu1 %916  ;;  %v905_v14 = vpop.xlane.xlu0 %904  ;;  %v820_v15 = vrot.slane %v819_v12, 1 }
 0x241   : > { %v855_v25 = vmin.f32 %v853_v3, %v854_v10  ;;  %v918_v16 = vrot.slane %v917_v27, 4  ;;  %v906_v17 = vrot.slane %v905_v14, 4  ;;  %v833_v43 = vmax.f32 %v831_v9, %v832_v52 }
 0x242   : > { %v821_v20 = vmax.f32 %v819_v12, %v820_v15  ;;  %v843_v21 = vmin.f32 %v841_v11, %v842_v13 }
 0x243   : > { %v856_v22 = vrot.slane %v855_v25, 1  ;;  %v919_v59 = vmax.f32 %v917_v27, %v918_v16  ;;  %v907_v23 = vmax.f32 %v905_v14, %v906_v17 }
 0x244   : > { %v941_v49 = vpop.xlane.xlu1 %940  ;;  %v929_v39 = vpop.xlane.xlu0 %928  ;;  %1380 = vpush %v821_v20  ;;  %v844_v58 = vrot.slane %v843_v21, 1 }
 0x245   : > { %v857_v28 = vmin.f32 %v855_v25, %v856_v22  ;;  %v920_v37 = vrot.slane %v919_v59, 2  ;;  %v908_v33 = vrot.slane %v907_v23, 2  ;;  %v942_v34 = vrot.slane %v941_v49, 4  ;;  %1382 = vpush %v833_v43 }
 0x246   : > { %v930_v29 = vrot.slane %v929_v39, 4  ;;  %v845_v31 = vmin.f32 %v843_v21, %v844_v58 }
 0x247   : > { %v943_v38 = vmin.f32 %v941_v49, %v942_v34  ;;  %v909_v41 = vmax.f32 %v907_v23, %v908_v33  ;;  %v921_v44 = vmax.f32 %v919_v59, %v920_v37 }
 0x248   : > { %v931_v40 = vmin.f32 %v929_v39, %v930_v29  ;;  %v1007_v45 = vpop.xlane.xlu1 %1006  ;;  %v995_v47 = vpop.xlane.xlu0 %994  ;;  %1384 = vpush %v845_v31 }
 0x249   : > { %v944_v48 = vrot.slane %v943_v38, 2  ;;  %v1008_v50 = vrot.slane %v1007_v45, 4  ;;  %v996_v30 = vrot.slane %v995_v47, 4  ;;  %1386 = vpush %v857_v28  ;;  %v910_v32 = vrot.slane %v909_v41, 1 }
 0x24a   : > { %v932_v51 = vrot.slane %v931_v40, 2  ;;  %v922_v53 = vrot.slane %v921_v44, 1 }
 0x24b   : > { %v1009_v54 = vmax.f32 %v1007_v45, %v1008_v50  ;;  %v997_v56 = vmax.f32 %v995_v47, %v996_v30  ;;  %v945_v46 = vmin.f32 %v943_v38, %v944_v48  ;;  %v911_v57 = vmax.f32 %v909_v41, %v910_v32 }
 0x24c   : > { %v933_v55 = vmin.f32 %v931_v40, %v932_v51  ;;  %v1031_v35 = vpop.xlane.xlu1 %1030  ;;  %v1019_v26 = vpop.xlane.xlu0 %1018  ;;  %v923_v60 = vmax.f32 %v921_v44, %v922_v53  ;;  %v1130_v30 = vstv %s1375_s11  ;;  %v1133_v53 = vstv %s1377_s12 }
 0x24d   : > { %v1010_v61 = vrot.slane %v1009_v54, 2  ;;  %v998_v62 = vrot.slane %v997_v56, 2  ;;  %v1032_v24 = vrot.slane %v1031_v35, 4  ;;  %v1020_v63 = vrot.slane %v1019_v26, 4  ;;  %1388 = vpush %v911_v57 }
 0x24e   : > { %v934_v42 = vrot.slane %v933_v55, 1  ;;  %v946_v0 = vrot.slane %v945_v46, 1  ;;  %1390 = vpush %v923_v60  ;;  %v1131_v32 = vsel %vm1129_vm5, %v1130_v30, 0.0  ;;  %vm1177_vm5 = vcmp.eq.s32.totalorder %v1832_v19, 16 }
 0x24f   : > { %v1033_v1 = vmin.f32 %v1031_v35, %v1032_v24  ;;  %v1021_v2 = vmin.f32 %v1019_v26, %v1020_v63  ;;  %v999_v4 = vmax.f32 %v997_v56, %v998_v62  ;;  %v1011_v5 = vmax.f32 %v1009_v54, %v1010_v61 }
 0x250   : > { %v1097_v36 = vpop.xlane.xlu1 %1096  ;;  %v1085_v18 = vpop.xlane.xlu0 %1084  ;;  %v935_v6 = vmin.f32 %v933_v55, %v934_v42  ;;  %v947_v7 = vmin.f32 %v945_v46, %v946_v0  ;;  %v1134_v54 = vsel %vm1132_vm6, %v1133_v53, %v1131_v32  ;;  %v1136_v56 = vstv %s1379_s13 }
 0x251   : > { %v1034_v3 = vrot.slane %v1033_v1, 2  ;;  %v1022_v8 = vrot.slane %v1021_v2, 2  ;;  %v1098_v9 = vrot.slane %v1097_v36, 4  ;;  %v1086_v10 = vrot.slane %v1085_v18, 4 }
 0x252   : > { %1392 = vpush %v935_v6  ;;  %v1000_v11 = vrot.slane %v999_v4, 1  ;;  %v1012_v12 = vrot.slane %v1011_v5, 1  ;;  %v1137_v46 = vsel %vm1135_vm7, %v1136_v56, %v1134_v54  ;;  %vm1180_vm6 = vcmp.eq.s32.totalorder %v1832_v19, 17 }
 0x253   : > { %v1099_v52 = vmax.f32 %v1097_v36, %v1098_v9  ;;  %v1087_v13 = vmax.f32 %v1085_v18, %v1086_v10  ;;  %1394 = vpush %v947_v7  ;;  %v1023_v27 = vmin.f32 %v1021_v2, %v1022_v8  ;;  %v1035_v14 = vmin.f32 %v1033_v1, %v1034_v3 }
 0x254   : > { %v1121_v15 = vpop.xlane.xlu1 %1120  ;;  %v1109_v25 = vpop.xlane.xlu0 %1108  ;;  %v1001_v16 = vmax.f32 %v999_v4, %v1000_v11  ;;  %v1013_v17 = vmax.f32 %v1011_v5, %v1012_v12  ;;  %vm1183_vm7 = vcmp.eq.s32.totalorder %v1832_v19, 18 }
 0x255   : > { %v1100_v43 = vrot.slane %v1099_v52, 2  ;;  %v1088_v20 = vrot.slane %v1087_v13, 2  ;;  %v1122_v21 = vrot.slane %v1121_v15, 4  ;;  %v1110_v22 = vrot.slane %v1109_v25, 4 }
 0x256   : > { %1396 = vpush %v1001_v16  ;;  %v1024_v59 = vrot.slane %v1023_v27, 1  ;;  %v1036_v23 = vrot.slane %v1035_v14, 1 }
 0x257   : > { %v1123_v49 = vmin.f32 %v1121_v15, %v1122_v21  ;;  %v1111_v39 = vmin.f32 %v1109_v25, %v1110_v22  ;;  %1398 = vpush %v1013_v17  ;;  %v1089_v58 = vmax.f32 %v1087_v13, %v1088_v20  ;;  %v1101_v28 = vmax.f32 %v1099_v52, %v1100_v43 }
 0x258   : > { %v1025_v37 = vmin.f32 %v1023_v27, %v1024_v59  ;;  %v1037_v33 = vmin.f32 %v1035_v14, %v1036_v23 }
 0x259   : > { %v1124_v34 = vrot.slane %v1123_v49, 2  ;;  %v1112_v29 = vrot.slane %v1111_v39, 2  ;;  %v1090_v31 = vrot.slane %v1089_v58, 1  ;;  %v1102_v38 = vrot.slane %v1101_v28, 1 }
 0x25a   : > { %1400 = vpush %v1025_v37 }
 0x25b   : > { %v1125_v40 = vmin.f32 %v1123_v49, %v1124_v34  ;;  %v1113_v41 = vmin.f32 %v1111_v39, %v1112_v29  ;;  %1402 = vpush %v1037_v33  ;;  %v1091_v44 = vmax.f32 %v1089_v58, %v1090_v31  ;;  %v1103_v45 = vmax.f32 %v1101_v28, %v1102_v38 }
 0x25d   : > { %1404 = vpush %v1091_v44  ;;  %v1114_v47 = vrot.slane %v1113_v41, 1  ;;  %v1126_v48 = vrot.slane %v1125_v40, 1 }
 0x25e   : > { %1406 = vpush %v1103_v45 }
 0x25f   : > { %v1115_v51 = vmin.f32 %v1113_v41, %v1114_v47  ;;  %v1127_v50 = vmin.f32 %v1125_v40, %v1126_v48 }
 0x261   : > { %1408 = vpush %v1115_v51 }
 0x262   : > { %1410 = vpush %v1127_v50 }
 0x275   : > { %s1381_s14 = spop %1380 }
 0x276   : > { %s1383_s15 = spop %1382  ;;  %v1139_v55 = vstv %s1381_s14  ;;  %s1356_s14 = sshll.u32 %s1641_s10, 3 }
 0x277   : > { %v1140_v35 = vsel %vm1138_vm8, %v1139_v55, %v1137_v46  ;;  %v1142_v26 = vstv %s1383_s15 }
 0x278   : > { %v1143_v60 = vsel %vm1141_vm9, %v1142_v26, %v1140_v35 }
 0x279   : > { %s1955_s16 = spop %1384 }
 0x27a   : > { %s1958_s17 = spop %1386  ;;  %v1163_v36 = vstv %s1955_s16 }
 0x27b   : > { %v1166_v6 = vstv %s1958_s17  ;;  %s561_s17 = scalar_lea.vmem [#allocation6], %s1356_s14 }
 0x27e   : > { %s1389_s18 = spop %1388 }
 0x27f   : > { %s1391_s19 = spop %1390  ;;  %v1145_v57 = vstv %s1389_s18  ;;  %s1362_s18 = sshll.u32 %s1576_s25, 7 }
 0x280   : > { %v1146_v61 = vsel %vm1144_vm10, %v1145_v57, %v1143_v60  ;;  %v1148_v62 = vstv %s1391_s19  ;;  %s1201_s19 = sshll.u32 %s561_s17, 4  ;;  %s1995_s25 = scalar_lea.hbm %s2045_s6, %s1362_s18  ;;  %s1997_s19 = int_to_ptr.vmem [resolvable:$true] %s1201_s19 }
 0x281   : > { %v1149_v63 = vsel %vm1147_vm11, %v1148_v62, %v1146_v61 }
 0x283   : > { %s1962_s20 = spop %1392 }
 0x284   : > { %s1965_s26 = spop %1394  ;;  %v1169_v3 = vstv %s1962_s20 }
 0x285   : > { %v1172_v9 = vstv %s1965_s26 }
 0x287   : > { %s1397_s28 = spop %1396 }
 0x288   : > { %v1151_v24 = vstv %s1397_s28  ;;  %s1399_s29 = spop %1398  ;;  %s1188_s28 = scalar_lea.sflag [#allocation7], %s1641_s10 }
 0x289   : > { %v1152_v42 = vsel %vm1150_vm12, %v1151_v24, %v1149_v63  ;;  %v1154_v0 = vstv %s1399_s29  ;;  %s1453_s29 = scalar_lea.vmem %s1997_s19, 128 }
 0x28a   : > { %v1155_v1 = vsel %vm1153_vm13, %v1154_v0, %v1152_v42  ;;  %p1454_p0 = scmp.ne.s32.totalorder %s1997_s19, %s1453_s29 }
 0x28b   : > { %s1969_s7 = spop %1400 }
 0x28c   : > { %s1972_s11 = spop %1402  ;;  %v1175_v11 = vstv %s1969_s7  ;;  %p1455_p1 = pnand %p1454_p0, %p1598_p6 }
 0x28d   : > { %v1178_v52 = vstv %s1972_s11  ;;  %s1519_s7 = smov [#allocation6]  }
 0x28e   : > { %s1405_s12 = spop %1404  ;;  %p1456_p2 = pneg %p1455_p1 }
 0x28f   : > { %v1157_v2 = vstv %s1405_s12  ;;  %s1407_s13 = spop %1406  ;;  %s1457_s11 = sshll.u32 %s1519_s7, 4  ;;  %s1458_s11 = int_to_ptr.vmem [resolvable:$false] %s1457_s11 }
 0x290   : > { %v1158_v4 = vsel %vm1156_vm14, %v1157_v2, %v1155_v1  ;;  %v1160_v5 = vstv %s1407_s13  ;;  %s1459_s12 = scalar_lea.vmem %s1458_s11, 256  ;;  %p1460_p3 = scmp.lt.s32.totalorder %s1997_s19, %s1458_s11 }
 0x291   : > { %v1161_v18 = vsel %vm1159_vm15, %v1160_v5, %v1158_v4  ;;  %p1461_p4 = scmp.lt.s32.totalorder %s1459_s12, %s1453_s29 }
 0x292   : > { %v1164_v7 = vsel %vm1162_vm0, %v1163_v36, %v1161_v18  ;;  %s1409_s15 = spop %1408 }
 0x293   : > { %v1167_v8 = vsel %vm1165_vm1, %v1166_v6, %v1164_v7  ;;  %s1411_s16 = spop %1410  ;;  %v1181_v14 = vstv %s1409_s15  ;;  %p1462_p5 = por %p1461_p4, %p1460_p3 }
 0x294   : > { %v1170_v10 = vsel %vm1168_vm2, %v1169_v3, %v1167_v8  ;;  %v1184_v25 = vstv %s1411_s16 }
 0x295   : > { %v1173_v12 = vsel %vm1171_vm3, %v1172_v9, %v1170_v10  ;;  %p1463_p7 = pnand %p1462_p5, %p1456_p2 }
 0x296   : > { %v1176_v13 = vsel %vm1174_vm4, %v1175_v11, %v1173_v12 }
 0x297   : > { %v1179_v27 = vsel %vm1177_vm5, %v1178_v52, %v1176_v13 }
 0x298   : > { %v1182_v15 = vsel %vm1180_vm6, %v1181_v14, %v1179_v27 }
 0x299   : > { %v1185_v16 = vsel %vm1183_vm7, %v1184_v25, %v1182_v15 }
 0x29a   : > { %1186 = vst [vmem:[%s561_s17] sm:$0xff] %v1185_v16 }
 0x29b   : > { %1466 = shalt.err (!%p1463_p7)
}
 0x29c   : > { %s1467_s10 = scalar_lea.hbm %s1995_s25, 128  ;;  %s1471_s15 = scalar_lea.hbm %s2045_s6, 256 }
 0x29d   : > { %p1468_p10 = scmp.ne.s32.totalorder %s1995_s25, %s1467_s10  ;;  %p1472_p13 = scmp.lt.u32.totalorder %s1995_s25, %s2045_s6 }
 0x29e   : > { %p1473_p0 = scmp.lt.u32.totalorder %s1471_s15, %s1467_s10  ;;  %p1475_p2 = scmp.lt.u32.totalorder %s1467_s10, %s1995_s25 }
 0x29f   : > { %p1469_p11 = pnand %p1468_p10, %p1598_p6 }
 0x2a0   : > { %p1474_p1 = por %p1473_p0, %p1472_p13 }
 0x2a1   : > { %p1470_p12 = pneg %p1469_p11 }
 0x2a2   : > { %p1476_p3 = por %p1475_p2, %p1474_p1 }
 0x2a4   : > { %p1477_p4 = pnand %p1476_p3, %p1470_p12 }
 0x2a6   : > { %1480 = shalt.err (!%p1477_p4)
}
 0x2a7   : > { %1412 = dma.vmem_to_hbm [thread:$0]  (%p1598_p6), %s1997_s19, 128, %s1995_s25, %s1188_s28  }
 0x2a8 PF: > { %s1213_s17 = sand.u32 1, %s1503_s21   ;;  %p1415_p5 = pnand %p1346_p9, %p1602_p8 }
 0x2a9   : > { %s1214_s20 = scalar_lea.sflag [#allocation7], %s1213_s17 }
 0x2aa   : > { %1498 = dma.done.wait (!%p1415_p5), %s1214_s20, 128  }
 0x2ab   : > { %1500 = vsyncadd (!%p1415_p5), %s1214_s20, 4294967168  ;;  %p16_p7 = scmp.ge.s32.totalorder %s1580_s27, 4   ;;  %s2051_s21 = smov %s1507_s22 }
 0x2ac   : > { %s2052_s22 = smov %s1511_s23  ;;  %s2053_s23 = smov %s1592_s30 }
 0x2ad   : > { %s2054_s24 = smov %s1580_s27  ;;  %18 = sbr.rel (!%p16_p7) target bundleno = 3 (0x3), region = 266 }
 0x2b4   :  { %1219 = vsyncpa [#allocation7], 1 }
 0x2b5   :  { %1221 = vsyncpa [#allocation7 + $0x1], 1 }

</bundles_post_ra>
